<compile_context>
chip_gen: v7x
topology: tpu7x:2x2x1
jax: 0.10.0
libtpu: 0.0.40
codegen_flags: <defaults>
</compile_context>

<pallas_src>
import functools
import math

import jax
import jax.numpy as jnp
from jax.experimental import pallas as pl
from jax.experimental.pallas import tpu as pltpu


# ---------------------------------------------------------------------------
# helpers
# ---------------------------------------------------------------------------
def _pick_block(dim, candidates=(512, 256, 128)):
    """Largest candidate tile that divides `dim`, else the full dim."""
    for c in candidates:
        if dim % c == 0:
            return c
    return dim


# Budgeted for v7x's 64 MiB VMEM per TensorCore; also fine on v5e/v6e (128 MiB).
_VMEM_LIMIT = 64 * 1024 * 1024


# ---------------------------------------------------------------------------
# Tiled, pipelined matmul kernel:  x (M, K) @ w (K, N) -> (M, N)
# Weights stored pre-transposed (in_features, out_features): no in-kernel w.T.
# ---------------------------------------------------------------------------
def _matmul_kernel(x_ref, w_ref, o_ref, acc_ref):
    @pl.when(pl.program_id(2) == 0)
    def _init():
        acc_ref[...] = jnp.zeros_like(acc_ref)

    # MXU fed in the input dtype; accumulate in f32.
    acc_ref[...] += jnp.dot(x_ref[...], w_ref[...],
                            preferred_element_type=jnp.float32)

    @pl.when(pl.program_id(2) == pl.num_programs(2) - 1)
    def _store():
        o_ref[...] = acc_ref[...].astype(o_ref.dtype)


def pallas_linear(x, w):
    m, k = x.shape
    k2, n = w.shape
    assert k == k2
    bm = _pick_block(m)
    bn = _pick_block(n)
    bk = _pick_block(k)
    grid = (m // bm, n // bn, k // bk)
    return pl.pallas_call(
        _matmul_kernel,
        out_shape=jax.ShapeDtypeStruct((m, n), x.dtype),
        grid=grid,
        in_specs=[
            pl.BlockSpec((bm, bk), lambda i, j, kk: (i, kk)),
            pl.BlockSpec((bk, bn), lambda i, j, kk: (kk, j)),
        ],
        out_specs=pl.BlockSpec((bm, bn), lambda i, j, kk: (i, j)),
        scratch_shapes=[pltpu.VMEM((bm, bn), jnp.float32)],
        compiler_params=pltpu.CompilerParams(
            dimension_semantics=("parallel", "parallel", "arbitrary"),
            vmem_limit_bytes=_VMEM_LIMIT,
        ),
    )(x, w)


# ---------------------------------------------------------------------------
# RoPE kernel: applied once per token to the Q and K head-columns of the fused
# QKV projection output.  rotate_half via pltpu.roll + pre-signed sin table.
# ---------------------------------------------------------------------------
def _rope_kernel(x_ref, cos_ref, sin_ref, o_ref):
    x = x_ref[...]
    d = x.shape[-1]
    # roll by D/2 -> [x2, x1]; sin is pre-signed ([-sin, sin]) so this equals
    # [x1*cos - x2*sin, x2*cos + x1*sin]  (flash-attn / GPT-NeoX RoPE).
    rot = pltpu.roll(x, shift=d // 2, axis=x.ndim - 1)
    o_ref[...] = (x * cos_ref[...] + rot * sin_ref[...]).astype(o_ref.dtype)


def pallas_rope_heads(x2d, cos, sin, *, batch, seq_len, num_heads, head_dim):
    """Rotate the first num_heads*head_dim columns of x2d (shape (B*T, >= H*D))."""
    blk = _pick_block(seq_len, (512, 256, 128))
    nt = seq_len // blk
    grid = (batch, num_heads, nt)
    return pl.pallas_call(
        _rope_kernel,
        out_shape=jax.ShapeDtypeStruct((batch * seq_len, num_heads * head_dim),
                                       x2d.dtype),
        grid=grid,
        in_specs=[
            pl.BlockSpec((blk, head_dim), lambda b, h, ti: (b * nt + ti, h)),
            pl.BlockSpec((blk, head_dim), lambda b, h, ti: (ti, 0)),
            pl.BlockSpec((blk, head_dim), lambda b, h, ti: (ti, 0)),
        ],
        out_specs=pl.BlockSpec((blk, head_dim), lambda b, h, ti: (b * nt + ti, h)),
        compiler_params=pltpu.CompilerParams(
            dimension_semantics=("parallel", "parallel", "parallel"),
            vmem_limit_bytes=_VMEM_LIMIT,
        ),
    )(x2d, cos, sin)


# ---------------------------------------------------------------------------
# Flash-attention kernel: grid (B, H, q_tiles, kv_tiles), online softmax.
# ---------------------------------------------------------------------------
def _flash_attn_kernel(q_ref, k_ref, v_ref, o_ref, m_ref, l_ref, acc_ref, *, scale):
    qi = pl.program_id(2)
    ki = pl.program_id(3)

    @pl.when(ki == 0)
    def _init():
        m_ref[...] = jnp.full_like(m_ref, -jnp.inf)
        l_ref[...] = jnp.zeros_like(l_ref)
        acc_ref[...] = jnp.zeros_like(acc_ref)

    # kv tiles strictly above the causal diagonal contribute nothing: skip them.
    @pl.when(ki <= qi)
    def _compute():
        q = q_ref[...]
        k = k_ref[...]
        v = v_ref[...]
        # q @ k.T without materializing a transpose: contract last dims of both.
        s = jax.lax.dot_general(q, k, (((1,), (1,)), ((), ())),
                                preferred_element_type=jnp.float32) * scale
        # Only the diagonal tile (ki == qi) actually needs masking (block_q ==
        # block_k); use a large finite negative so no -inf/NaN hazards.
        row = jax.lax.broadcasted_iota(jnp.int32, s.shape, 0)
        col = jax.lax.broadcasted_iota(jnp.int32, s.shape, 1)
        s = jnp.where(jnp.logical_or(ki < qi, col <= row), s, -1e30)

        m_prev = m_ref[...]
        m_new = jnp.maximum(m_prev, jnp.max(s, axis=-1, keepdims=True))
        alpha = jnp.exp(m_prev - m_new)
        p = jnp.exp(s - m_new)
        l_ref[...] = alpha * l_ref[...] + jnp.sum(p, axis=-1, keepdims=True)
        acc_ref[...] = alpha * acc_ref[...] + jnp.dot(
            p.astype(v.dtype), v, preferred_element_type=jnp.float32)
        m_ref[...] = m_new

    @pl.when(ki == pl.num_programs(3) - 1)
    def _finalize():
        inv_l = pl.reciprocal(l_ref[...], approx=True)   # EUP, nearly free
        o_ref[...] = (acc_ref[...] * inv_l).astype(o_ref.dtype)


def pallas_flash_attention(qk_rot, qkv, *, batch, seq_len, num_heads,
                           num_kv_heads, head_dim):
    """qk_rot: (B*T, (H+Hkv)*D) rotated Q|K; qkv: (B*T, (H+2*Hkv)*D) with V last.

    Returns the attention output as a (B*T, H*D) activation (ready for o_proj).
    """
    num_kv_groups = num_heads // num_kv_heads
    d = head_dim
    blk = _pick_block(seq_len, (256, 128))   # block_q == block_k
    nt = seq_len // blk
    scale = 1.0 / math.sqrt(d)
    k_col0 = num_heads                        # K head-columns start here in qk_rot
    v_col0 = num_heads + num_kv_heads         # V head-columns start here in qkv
    grid = (batch, num_heads, nt, nt)
    kernel = functools.partial(_flash_attn_kernel, scale=scale)
    return pl.pallas_call(
        kernel,
        out_shape=jax.ShapeDtypeStruct((batch * seq_len, num_heads * d),
                                       qk_rot.dtype),
        grid=grid,
        in_specs=[
            # Q tile from the rotated buffer.
            pl.BlockSpec((blk, d), lambda b, h, qi, ki: (b * nt + qi, h)),
            # K tile: GQA head mapping done in the index_map (no jnp.repeat).
            pl.BlockSpec((blk, d),
                         lambda b, h, qi, ki: (b * nt + ki,
                                               k_col0 + h // num_kv_groups)),
            # V tile: read straight from the fused QKV projection output.
            pl.BlockSpec((blk, d),
                         lambda b, h, qi, ki: (b * nt + ki,
                                               v_col0 + h // num_kv_groups)),
        ],
        # Lane-dense output slab of the (B*T, H*D) activation (no transpose).
        out_specs=pl.BlockSpec((blk, d), lambda b, h, qi, ki: (b * nt + qi, h)),
        scratch_shapes=[
            pltpu.VMEM((blk, 1), jnp.float32),   # running max m
            pltpu.VMEM((blk, 1), jnp.float32),   # running denominator l
            pltpu.VMEM((blk, d), jnp.float32),   # output accumulator
        ],
        compiler_params=pltpu.CompilerParams(
            dimension_semantics=("parallel", "parallel", "parallel", "arbitrary"),
            vmem_limit_bytes=_VMEM_LIMIT,
        ),
    )(qk_rot, qk_rot, qkv)


# ---------------------------------------------------------------------------
# Attention module (forward only; no KV cache / padding mask / window here)
# ---------------------------------------------------------------------------
class Attention:
    def __init__(self, hidden_size=512, num_heads=4, num_kv_heads=None,
                 qkv_bias=False, qk_norm=False, window_size=None,
                 rope_theta=10000.0, key=None):
        self.hidden_size = hidden_size
        self.num_heads = num_heads
        self.num_kv_heads = num_heads if num_kv_heads is None else num_kv_heads
        self.num_kv_groups = num_heads // self.num_kv_heads
        self.head_dim = hidden_size // num_heads
        self.kv_dim = self.num_kv_heads * self.head_dim
        self.rope_theta = rope_theta
        assert not qkv_bias and not qk_norm and window_size is None
        # Lane-dense per-head tiles: head_dim must be a multiple of 128.
        # TODO(synk): fold several heads per block to support head_dim < 128.
        assert self.head_dim % 128 == 0 and self.head_dim % 2 == 0

        key = jax.random.PRNGKey(0) if key is None else key
        kq, kk, kv, ko = jax.random.split(key, 4)
        s = 1.0 / math.sqrt(hidden_size)
        # Weights stored pre-transposed (in_features, out_features).
        self.wq_t = jax.random.normal(kq, (hidden_size, hidden_size), jnp.float32) * s
        self.wk_t = jax.random.normal(kk, (hidden_size, self.kv_dim), jnp.float32) * s
        self.wv_t = jax.random.normal(kv, (hidden_size, self.kv_dim), jnp.float32) * s
        self.wo_t = jax.random.normal(ko, (hidden_size, hidden_size), jnp.float32) * s
        # Fused QKV weight: one pass over the activations.
        self.w_qkv = jnp.concatenate([self.wq_t, self.wk_t, self.wv_t], axis=1)

    def _rope_tables(self, seq_len, dtype=jnp.float32):
        d = self.head_dim
        inv_freq = 1.0 / (self.rope_theta
                          ** (jnp.arange(0, d, 2, dtype=jnp.float32) / d))
        pos = jnp.arange(seq_len, dtype=jnp.float32)
        freqs = jnp.outer(pos, inv_freq)                  # (T, D//2)
        cos = jnp.cos(freqs)
        sin = jnp.sin(freqs)
        # Full-width (T, D) tables (lane-dense); sin pre-signed for the roll trick.
        cos_full = jnp.concatenate([cos, cos], axis=-1)
        sin_signed = jnp.concatenate([-sin, sin], axis=-1)
        return cos_full.astype(dtype), sin_signed.astype(dtype)

    def __call__(self, hidden_states):
        b, t, c = hidden_states.shape
        assert c == self.hidden_size
        assert t % 8 == 0                      # sublane-aligned token tiles
        x2d = hidden_states.reshape(b * t, c)

        # Fused QKV projection (tiled, pipelined, pre-transposed weight).
        qkv = pallas_linear(x2d, self.w_qkv)   # (B*T, (H + 2*Hkv) * D)

        # RoPE applied exactly once per token to the Q and K head columns.
        cos, sin = self._rope_tables(t, hidden_states.dtype)
        qk_rot = pallas_rope_heads(
            qkv, cos, sin, batch=b, seq_len=t,
            num_heads=self.num_heads + self.num_kv_heads, head_dim=self.head_dim)

        # Flash attention; output is already the (B*T, H*D) activation.
        o2d = pallas_flash_attention(
            qk_rot, qkv, batch=b, seq_len=t, num_heads=self.num_heads,
            num_kv_heads=self.num_kv_heads, head_dim=self.head_dim)

        out = pallas_linear(o2d, self.wo_t)
        return out.reshape(b, t, self.hidden_size)


# ---------------------------------------------------------------------------
# Pure-JAX reference (same math, independent formulation) for correctness
# ---------------------------------------------------------------------------
def reference_forward(attn, x):
    b, t, c = x.shape
    d = attn.head_dim
    q = (x @ attn.wq_t).reshape(b, t, attn.num_heads, d)
    k = (x @ attn.wk_t).reshape(b, t, attn.num_kv_heads, d)
    v = (x @ attn.wv_t).reshape(b, t, attn.num_kv_heads, d)

    inv_freq = 1.0 / (attn.rope_theta ** (jnp.arange(0, d, 2, dtype=jnp.float32) / d))
    pos = jnp.arange(t, dtype=jnp.float32)
    fr = jnp.outer(pos, inv_freq)
    cos = jnp.cos(fr)[None, :, None, :]
    sin = jnp.sin(fr)[None, :, None, :]

    def rope(u):
        u1, u2 = u[..., : d // 2], u[..., d // 2:]
        return jnp.concatenate([u1 * cos - u2 * sin, u2 * cos + u1 * sin], axis=-1)

    q, k = rope(q), rope(k)
    if attn.num_kv_groups > 1:
        k = jnp.repeat(k, attn.num_kv_groups, axis=2)
        v = jnp.repeat(v, attn.num_kv_groups, axis=2)
    q = jnp.transpose(q, (0, 2, 1, 3))
    k = jnp.transpose(k, (0, 2, 1, 3))
    v = jnp.transpose(v, (0, 2, 1, 3))
    s = jnp.einsum("bhqd,bhkd->bhqk", q, k) / math.sqrt(d)
    mask = jnp.tril(jnp.ones((t, t), bool))
    s = jnp.where(mask[None, None], s, -jnp.inf)
    p = jax.nn.softmax(s, axis=-1)
    o = jnp.einsum("bhqk,bhkd->bhqd", p, v)
    o = jnp.transpose(o, (0, 2, 1, 3)).reshape(b, t, attn.hidden_size)
    return o @ attn.wo_t


if __name__ == "__main__":
    batch, seq_len, hidden, heads, kv_heads = 2, 128, 512, 4, 2
    key = jax.random.PRNGKey(0)
    kx, kw = jax.random.split(key)
    x = jax.random.normal(kx, (batch, seq_len, hidden), jnp.float32)

    attn = Attention(hidden_size=hidden, num_heads=heads, num_kv_heads=kv_heads,
                     key=kw)

    out = jax.block_until_ready(attn(x))
    ref = reference_forward(attn, x)

    assert out.shape == (batch, seq_len, hidden)
    max_err = float(jnp.max(jnp.abs(out - ref)))
    # tolerance accounts for approx reciprocal + online-softmax reassociation
    assert jnp.allclose(out, ref, atol=1e-2, rtol=1e-2), max_err

    print("KERNEL_OK")
</pallas_src>

<mosaic_0001>
module attributes {stable_mosaic.version = 11 : i64} {
  func.func @_matmul_kernel(%arg0: i32, %arg1: i32, %arg2: i32, %arg3: memref<256x512xf32, #tpu.memory_space<vmem>>, %arg4: memref<512x512xf32, #tpu.memory_space<vmem>>, %arg5: memref<256x512xf32, #tpu.memory_space<vmem>>, %arg6: memref<256x512xf32, #tpu.memory_space<vmem>>) attributes {dimension_semantics = [#tpu.dimension_semantics<parallel>, #tpu.dimension_semantics<parallel>, #tpu.dimension_semantics<arbitrary>], iteration_bounds = array<i64: 1, 2, 1>, scalar_prefetch = 0 : i64, scratch_operands = 1 : i64, tpu.core_type = #tpu.core_type<tc>, window_params = [{transform_indices = @transform_0, window_bounds = array<i64: 256, 512>}, {transform_indices = @transform_1, window_bounds = array<i64: 512, 512>}, {transform_indices = @transform_2, window_bounds = array<i64: 256, 512>}]} {
    %c0_i32 = arith.constant 0 : i32
    %0 = arith.cmpi eq, %arg2, %c0_i32 : i32
    %1 = arith.extui %0 : i1 to i32
    %c0_i32_0 = arith.constant 0 : i32
    %2 = arith.cmpi ne, %1, %c0_i32_0 : i32
    scf.if %2 {
      %cst_10 = arith.constant 0.000000e+00 : f32
      %12 = vector.broadcast %cst_10 : f32 to vector<256x512xf32>
      %c0_11 = arith.constant 0 : index
      %c0_12 = arith.constant 0 : index
      %13 = vector.load %arg6[%c0_11, %c0_12] : memref<256x512xf32, #tpu.memory_space<vmem>>, vector<256x512xf32>
      tpu.vector_store %arg6[%c0_11, %c0_12], %12 {strides = array<i32>} : memref<256x512xf32, #tpu.memory_space<vmem>>, vector<256x512xf32>,
    } else {
    }
    %c0 = arith.constant 0 : index
    %c0_1 = arith.constant 0 : index
    %3 = vector.load %arg6[%c0, %c0_1] : memref<256x512xf32, #tpu.memory_space<vmem>>, vector<256x512xf32>
    %c0_2 = arith.constant 0 : index
    %c0_3 = arith.constant 0 : index
    %4 = vector.load %arg3[%c0_2, %c0_3] : memref<256x512xf32, #tpu.memory_space<vmem>>, vector<256x512xf32>
    %c0_4 = arith.constant 0 : index
    %c0_5 = arith.constant 0 : index
    %5 = vector.load %arg4[%c0_4, %c0_5] : memref<512x512xf32, #tpu.memory_space<vmem>>, vector<512x512xf32>
    %cst = arith.constant dense<0.000000e+00> : vector<256x512xf32>
    %6 = tpu.matmul %4, %5, %cst {dimension_numbers = #tpu.dot_dimension_numbers<[1], [0], [0], [1], [0, 0, 1, 1], [], []>} : vector<256x512xf32>, vector<512x512xf32>, vector<256x512xf32> -> vector<256x512xf32>
    %7 = arith.addf %3, %6 : vector<256x512xf32>
    %c0_6 = arith.constant 0 : index
    %c0_7 = arith.constant 0 : index
    %8 = vector.load %arg6[%c0_6, %c0_7] : memref<256x512xf32, #tpu.memory_space<vmem>>, vector<256x512xf32>
    tpu.vector_store %arg6[%c0_6, %c0_7], %7 {strides = array<i32>} : memref<256x512xf32, #tpu.memory_space<vmem>>, vector<256x512xf32>,
    %c0_i32_8 = arith.constant 0 : i32
    %9 = arith.cmpi eq, %arg2, %c0_i32_8 : i32
    %10 = arith.extui %9 : i1 to i32
    %c0_i32_9 = arith.constant 0 : i32
    %11 = arith.cmpi ne, %10, %c0_i32_9 : i32
    scf.if %11 {
      %c0_10 = arith.constant 0 : index
      %c0_11 = arith.constant 0 : index
      %12 = vector.load %arg6[%c0_10, %c0_11] : memref<256x512xf32, #tpu.memory_space<vmem>>, vector<256x512xf32>
      %c0_12 = arith.constant 0 : index
      %c0_13 = arith.constant 0 : index
      %13 = vector.load %arg5[%c0_12, %c0_13] : memref<256x512xf32, #tpu.memory_space<vmem>>, vector<256x512xf32>
      tpu.vector_store %arg5[%c0_12, %c0_13], %12 {strides = array<i32>} : memref<256x512xf32, #tpu.memory_space<vmem>>, vector<256x512xf32>,
    } else {
    }
    return
  }
  func.func @transform_0(%arg0: i32, %arg1: i32, %arg2: i32) -> (i32, i32) {
    %c0_i32 = arith.constant 0 : i32
    return %arg0, %arg2 : i32, i32
  }
  func.func @transform_1(%arg0: i32, %arg1: i32, %arg2: i32) -> (i32, i32) {
    %c0_i32 = arith.constant 0 : i32
    return %arg2, %arg1 : i32, i32
  }
  func.func @transform_2(%arg0: i32, %arg1: i32, %arg2: i32) -> (i32, i32) {
    %c0_i32 = arith.constant 0 : i32
    return %arg0, %arg1 : i32, i32
  }
}

</mosaic_0001>

<bundles_post_ra>
// kernel: tpu_custom_call.1
= control target key start
LH: loop header
LB: loop body
LE: loop exit
PB: predicated region body
PF: predicated region fallthrough
CT: control target
= control target key end

     0   :  { %7 = vsyncpa [#allocation4], 0  ;;  %s3800_s0 = inlined_call_operand.hbm [shape: f32[256,512], index: 0, kind: input, shape index: {}]   ;;  %s3801_s1 = inlined_call_operand.hbm [shape: f32[512,1024], index: 1, kind: input, shape index: {}]   ;;  %s3802_s2 = inlined_call_operand.hbm [shape: f32[256,1024], index: 2, kind: output, shape index: {}]  }
   0x1   :  { %8 = vsyncpa [#allocation7], 0 }
   0x2   :  { %10 = vsyncpa [#allocation7 + $0x1], 0 }
   0x3   :  { %11 = vsyncpa [#allocation5], 0 }
   0x4   :  { %13 = vsyncpa [#allocation5 + $0x1], 0  ;;  %s3185_s9 = smov 0   ;;  %s3187_s10 = smov 0  }
   0x5   :  { %s3189_s11 = smov 0   ;;  %s3191_s12 = smov 0  }
   0x6   :  { %s3193_s13 = smov 0   ;;  %s3195_s14 = smov 0  }
   0x7 LB: > { %s2533_s15 = sadd.s32 4294967295, %s3159_s14   ;;  %s2534_s16 = sadd.s32 4294967294, %s3159_s14   ;;  %s3159_s14 = sphi %s3195_s14, %s19_s14   ;;  %s3155_s13 = sphi %s3193_s13, %s3828_s13   ;;  %s3151_s12 = sphi %s3191_s12, %s3827_s12   ;;  %s3147_s11 = sphi %s3189_s11, %s3826_s11   ;;  %s3143_s10 = sphi %s3187_s10, %s3825_s10   ;;  %s3139_s9 = sphi %s3185_s9, %s3824_s9  }
   0x8   : > { %p82_p0 = scmp.ne.s32.totalorder %s3147_s11, %s3143_s10  ;;  %p83_p1 = scmp.eq.s32.totalorder %s3159_s14, 0 }
   0x9   : > { %p88_p2 = scmp.ne.s32.totalorder %s3143_s10, %s3139_s9  ;;  %p3222_p3 = scmp.eq.s32.totalorder %s2533_s15, 0 }
   0xa   : > { %p3226_p4 = por %p83_p1, %p82_p0  ;;  %p114_p5 = scmp.eq.s32.totalorder %s2533_s15, 1 }
   0xb   : > { %s3809_s17 = scalar_select %p3222_p3, 1, 0 }
   0xc   : > { %p3232_p6 = por %p3222_p3, %p88_p2  ;;  %p120_p7 = scmp.eq.s32.totalorder %s2534_s16, 1 }
   0xd   : > { %p3236_p8 = por %p114_p5, %p82_p0  ;;  %p2535_p9 = scmp.ge.s32.totalorder %s3159_s14, 1 }
   0xe   : > { %s3811_s19 = scalar_select %p3232_p6, 1, 0 }
   0xf   : > { %s3812_s20 = scalar_select %p3236_p8, 1, 0 }
  0x10   : > { %p3241_p10 = por %p120_p7, %p88_p2  ;;  %p127_p11 = scmp.lt.s32.totalorder %s3159_s14, 3 }
  0x11   : > { %s3161_s23 = smov [#allocation3]   ;;  %p2957_p1 = scmp.lt.s32.totalorder %s3159_s14, 2 }
  0x12   : > { %s3813_s21 = scalar_select %p3241_p10, 1, 0 }
  0x13   : > { %p3246_p12 = pnand %p2535_p9, %p127_p11  ;;  %s145_s24 = sshll.u32 %s3161_s23, 4  ;;  %s3250_s24 = int_to_ptr.vmem [resolvable:$true] %s145_s24 }
  0x14   : > { %p3264_p2 = pnand %p2957_p1, %p3226_p4  ;;  %s34_s27 = sadd.s32 1, %s3155_s13 }
  0x15   : > { %s3814_s22 = scalar_select %p3246_p12, 1, 0 }
  0x16   : > { %p2944_p13 = pneg %p3246_p12  ;;  %s3015_s30 = scalar_lea.hbm %s3800_s0, 16384 }
  0x17   : > { %s3816_s26 = scalar_select %p3264_p2, 1, 0 }
  0x18   : > { %p3258_p5 = pnand %p2944_p13, %p3222_p3  ;;  %p3016_p7 = scmp.ne.s32.totalorder %s3800_s0, %s3015_s30 }
  0x19   : > { %p3022_p4 = scmp.lt.u32.totalorder %s3015_s30, %s3800_s0 }
  0x1a   : > { %p3017_p9 = pneg %p3258_p5 }
  0x1c   : > { %p3018_p11 = pnand %p3017_p9, %p3016_p7 }
  0x1e   : > { %p3019_p13 = pneg %p3018_p11 }
  0x20   : > { %p3024_p1 = pnand %p3022_p4, %p3019_p13 }
  0x22   : > { %3027 = shalt.err (!%p3024_p1)
}
  0x23   : > { %s3028_s7 = scalar_lea.vmem %s3250_s24, 16384  ;;  %p3036_p6 = scmp.lt.s32.totalorder %s3250_s24, %s3250_s24 }
  0x24   : > { %p3029_p0 = scmp.ne.s32.totalorder %s3250_s24, %s3028_s7  ;;  %p3037_p3 = scmp.lt.s32.totalorder %s3028_s7, %s3028_s7 }
  0x26   : > { %p3031_p10 = pnand %p3029_p0, %p3017_p9  ;;  %p3038_p12 = por %p3037_p3, %p3036_p6 }
  0x28   : > { %p3032_p8 = pneg %p3031_p10 }
  0x2a   : > { %p3039_p2 = pnand %p3038_p12, %p3032_p8 }
  0x2c   : > { %3042 = shalt.err (!%p3039_p2)
}
  0x2d   : > { %s3162_s8 = smov 512   ;;  %s3163_s15 = smov 32  }
  0x2e   : > { %2947 = dma.hbm_to_vmem [thread:$0]  (!%p3258_p5), %s3800_s0, 16384, %s3250_s24, [#allocation4], %s3162_s8, %s3162_s8, %s3163_s15  }
  0x2f   : > { %p36_p3 = scmp.ge.s32.totalorder %s34_s27, 2  ;;  %s75_s23 = sadd.s32 1, %s3147_s11 }
  0x30   : > { %s159_s28 = sand.u32 1, %s3147_s11   ;;  %s2550_s3 = sshll.u32 %s3155_s13, 9 }
  0x31   : > { %s3830_s27 = smov (%p36_p3, %s34_s27), 0  ;;  %s2538_s29 = sshll.u32 %s159_s28, 11 }
  0x32   : > { %s71_s30 = ssub.s32 %s3155_s13, %s3830_s27  ;;  %s3303_s5 = scalar_lea.hbm %s3801_s1, %s2550_s3 }
  0x33   : > { %p73_p6 = scmp.eq.s32.totalorder %s71_s30, 0  ;;  %s163_s24 = scalar_lea.vmem [#allocation6], %s2538_s29 }
  0x34   : > { %s173_s6 = sshll.u32 %s163_s24, 4  ;;  %s3310_s16 = scalar_lea.sflag [#allocation7], %s159_s28  ;;  %s3308_s6 = int_to_ptr.vmem [resolvable:$true] %s173_s6 }
  0x35   : > { %s3306_s7 = scalar_select %p73_p6, %s3147_s11, %s75_s23  }
  0x36   : > { %s3043_s18 = scalar_lea.hbm %s3303_s5, 32768  ;;  %p3817_p10 = scmp.ne.s32.totalorder %s3816_s26, 0 }
  0x37   : > { %p3044_p8 = scmp.ne.s32.totalorder %s3303_s5, %s3043_s18  ;;  %s3048_s25 = scalar_lea.hbm %s3801_s1, 65536 }
  0x38   : > { %p3045_p12 = pneg %p3817_p10  ;;  %p3049_p2 = scmp.lt.u32.totalorder %s3303_s5, %s3801_s1 }
  0x39   : > { %p3050_p7 = scmp.lt.u32.totalorder %s3048_s25, %s3043_s18  ;;  %p3052_p11 = scmp.lt.u32.totalorder %s3043_s18, %s3303_s5 }
  0x3a   : > { %p3046_p0 = pnand %p3045_p12, %p3044_p8 }
  0x3b   : > { %p3051_p9 = por %p3050_p7, %p3049_p2 }
  0x3c   : > { %p3047_p5 = pneg %p3046_p0 }
  0x3d   : > { %p3053_p13 = por %p3052_p11, %p3051_p9 }
  0x3f   : > { %p3054_p4 = pnand %p3053_p13, %p3047_p5 }
  0x41   : > { %3057 = shalt.err (!%p3054_p4)
}
  0x42   : > { %s3058_s23 = scalar_lea.vmem %s3308_s6, 32768  ;;  %s3164_s28 = smov [#allocation6]  }
  0x43   : > { %p3059_p1 = scmp.ne.s32.totalorder %s3308_s6, %s3058_s23  ;;  %s3063_s24 = sshll.u32 %s3164_s28, 4  ;;  %s3064_s24 = int_to_ptr.vmem [resolvable:$false] %s3063_s24 }
  0x44   : > { %s3065_s30 = scalar_lea.vmem %s3064_s24, 65536  ;;  %p3066_p8 = scmp.lt.s32.totalorder %s3308_s6, %s3064_s24 }
  0x45   : > { %p3061_p3 = pnand %p3059_p1, %p3045_p12  ;;  %p3067_p0 = scmp.lt.s32.totalorder %s3065_s30, %s3058_s23 }
  0x47   : > { %p3062_p6 = pneg %p3061_p3  ;;  %p3068_p2 = por %p3067_p0, %p3066_p8 }
  0x49   : > { %p3069_p7 = pnand %p3068_p2, %p3062_p6 }
  0x4b   : > { %3072 = shalt.err (!%p3069_p7)
}
  0x4c   : > { %s3165_s18 = smov 1024   ;;  %p3818_p12 = scmp.ne.s32.totalorder %s3814_s22, 0 }
  0x4d   : > { %2951 = dma.hbm_to_vmem [thread:$0]  (!%p3817_p10), %s3303_s5, 32768, %s3308_s6, %s3310_s16, %s3165_s18, %s3162_s8, %s3163_s15  }
  0x4e   : > { %185 = sbr.rel (%p3818_p12) target bundleno = 640 (0x280), region = 28  ;;  %p3819_p5 = scmp.ne.s32.totalorder (!%p3818_p12), %s3809_s17, 0 }
  0x55   : > { %3126 = dma.done.wait (%p3819_p5), [#allocation4], 16384  }
  0x56   : > { %3128 = vsyncadd (%p3819_p5), [#allocation4], 4294950912  ;;  %s3347_s3 = sand.u32 1, %s3143_s10   ;;  %p3820_p10 = scmp.ne.s32.totalorder %s3811_s19, 0 }
  0x57   : > { %s2543_s26 = sshll.u32 %s3347_s3, 11  ;;  %s192_s25 = scalar_lea.sflag [#allocation7], %s3347_s3 }
  0x58   : > { %s3351_s29 = scalar_lea.vmem [#allocation6], %s2543_s26 }
  0x59   : > { %3130 = dma.done.wait (%p3820_p10), %s192_s25, 32768  }
  0x5a   : > { %3132 = vsyncadd (%p3820_p10), %s192_s25, 4294934528  ;;  %v611_v0 = vld [vmem:[%s3351_s29 + $0x8] sm:$0xff]  ;;  %v613_v2 = vld [vmem:[%s3351_s29 + $0x18] sm:$0xff]  ;;  %s2544_s17 = sshll.u32 %s3347_s3, 10  ;;  %s2551_s22 = sshll.u32 %s3151_s12, 9 }
  0x5b   : > { %v615_v1 = vld [vmem:[%s3351_s29 + $0x28] sm:$0xff]  ;;  %v617_v4 = vld [vmem:[%s3351_s29 + $0x38] sm:$0xff]  ;;  %v610_v5 = vld [vmem:[%s3351_s29] sm:$0xff]  ;;  %s3614_s19 = scalar_lea.vmem [#allocation8], %s2544_s17  ;;  %s3745_s6 = scalar_lea.hbm %s3802_s2, %s2551_s22 }
  0x5c   : > { %v2552_v3 = vpack.c.bf16 %v615_v1, %v611_v0  ;;  %v614_v6 = vld [vmem:[%s3351_s29 + $0x20] sm:$0xff]  ;;  %v2680_v7 = vpack.c.bf16 %v617_v4, %v613_v2  ;;  %v612_v9 = vld [vmem:[%s3351_s29 + $0x10] sm:$0xff]  ;;  %v619_v11 = vld [vmem:[%s3351_s29 + $0x48] sm:$0xff]  ;;  %s2426_s8 = sshll.u32 %s3614_s19, 4  ;;  %s2410_s12 = scalar_lea.sflag [#allocation5], %s3347_s3  ;;  %s3747_s8 = int_to_ptr.vmem [resolvable:$true] %s2426_s8 }
  0x5d   : > { %v2554_v8 = vpack.c.bf16 %v614_v6, %v610_v5  ;;  %v616_v10 = vld [vmem:[%s3351_s29 + $0x30] sm:$0xff]  ;;  %v623_v13 = vld [vmem:[%s3351_s29 + $0x68] sm:$0xff]  ;;  %v621_v14 = vld [vmem:[%s3351_s29 + $0x58] sm:$0xff]  ;;  %s3073_s16 = scalar_lea.vmem %s3747_s8, 16384  ;;  %p3821_p11 = scmp.ne.s32.totalorder %s3812_s20, 0 }
  0x5e   : > { %2553 = vmatprep.subr.bf16.mxu0 %v2552_v3  ;;  %v2682_v12 = vpack.c.bf16 %v616_v10, %v612_v9  ;;  %v625_v15 = vld [vmem:[%s3351_s29 + $0x78] sm:$0xff]  ;;  %2681 = vmatprep.subr.bf16.mxu1 %v2680_v7  ;;  %v2556_v16 = vpack.c.bf16 %v623_v13, %v619_v11  ;;  %v618_v18 = vld [vmem:[%s3351_s29 + $0x40] sm:$0xff]  ;;  %v620_v20 = vld [vmem:[%s3351_s29 + $0x50] sm:$0xff]  ;;  %p3074_p9 = scmp.ne.s32.totalorder %s3747_s8, %s3073_s16  ;;  %s3166_s4 = smov [#allocation8]  }
  0x5f   : > { %2555 = vmatpush1.bf16.msra.mxu0 %v2554_v8  ;;  %v2684_v17 = vpack.c.bf16 %v625_v15, %v621_v14  ;;  %v622_v19 = vld [vmem:[%s3351_s29 + $0x60] sm:$0xff]  ;;  %v624_v22 = vld [vmem:[%s3351_s29 + $0x70] sm:$0xff]  ;;  %v627_v23 = vld [vmem:[%s3351_s29 + $0x88] sm:$0xff]  ;;  %s3077_s23 = sshll.u32 %s3166_s4, 4  ;;  %s3078_s23 = int_to_ptr.vmem [resolvable:$false] %s3077_s23 }
  0x60   : > { %2683 = vmatpush1.bf16.msra.mxu1 %v2682_v12  ;;  %v2558_v21 = vpack.c.bf16 %v622_v19, %v618_v18  ;;  %v631_v24 = vld [vmem:[%s3351_s29 + $0xa8] sm:$0xff]  ;;  %2557 = vmatprep.subr.bf16.mxu0 %v2556_v16  ;;  %v2686_v25 = vpack.c.bf16 %v624_v22, %v620_v20  ;;  %v629_v27 = vld [vmem:[%s3351_s29 + $0x98] sm:$0xff]  ;;  %v626_v29 = vld [vmem:[%s3351_s29 + $0x80] sm:$0xff]  ;;  %p3075_p13 = pnand %p3074_p9, %p3821_p11  ;;  %s3079_s28 = scalar_lea.vmem %s3078_s23, 32768 }
  0x61   : > { %2685 = vmatprep.subr.bf16.mxu1 %v2684_v17  ;;  %v2560_v26 = vpack.c.bf16 %v631_v24, %v627_v23  ;;  %v633_v28 = vld [vmem:[%s3351_s29 + $0xb8] sm:$0xff]  ;;  %v630_v31 = vld [vmem:[%s3351_s29 + $0xa0] sm:$0xff]  ;;  %v628_v32 = vld [vmem:[%s3351_s29 + $0x90] sm:$0xff]  ;;  %p3080_p1 = scmp.lt.s32.totalorder %s3747_s8, %s3078_s23  ;;  %p3081_p3 = scmp.lt.s32.totalorder %s3079_s28, %s3073_s16 }
  0x62   : > { %v2688_v30 = vpack.c.bf16 %v633_v28, %v629_v27  ;;  %v632_v33 = vld [vmem:[%s3351_s29 + $0xb0] sm:$0xff]  ;;  %v2562_v34 = vpack.c.bf16 %v630_v31, %v626_v29  ;;  %v635_v35 = vld [vmem:[%s3351_s29 + $0xc8] sm:$0xff]  ;;  %v637_v37 = vld [vmem:[%s3351_s29 + $0xd8] sm:$0xff]  ;;  %p3076_p4 = pneg %p3075_p13 }
  0x63   : > { %2559 = vmatpush1.bf16.msra.mxu0 %v2558_v21  ;;  %v639_v36 = vld [vmem:[%s3351_s29 + $0xe8] sm:$0xff]  ;;  %v2690_v38 = vpack.c.bf16 %v632_v33, %v628_v32  ;;  %v641_v40 = vld [vmem:[%s3351_s29 + $0xf8] sm:$0xff]  ;;  %v634_v41 = vld [vmem:[%s3351_s29 + $0xc0] sm:$0xff]  ;;  %p3082_p6 = por %p3081_p3, %p3080_p1 }
  0x64   : > { %2687 = vmatpush1.bf16.msra.mxu1 %v2686_v25  ;;  %2561 = vmatprep.subr.bf16.mxu0 %v2560_v26  ;;  %v2564_v39 = vpack.c.bf16 %v639_v36, %v635_v35  ;;  %v638_v42 = vld [vmem:[%s3351_s29 + $0xe0] sm:$0xff]  ;;  %v2692_v43 = vpack.c.bf16 %v641_v40, %v637_v37  ;;  %v636_v44 = vld [vmem:[%s3351_s29 + $0xd0] sm:$0xff]  ;;  %v643_v46 = vld [vmem:[%s3351_s29 + $0x108] sm:$0xff] }
  0x65   : > { %2689 = vmatprep.subr.bf16.mxu1 %v2688_v30  ;;  %v640_v45 = vld [vmem:[%s3351_s29 + $0xf0] sm:$0xff]  ;;  %v647_v47 = vld [vmem:[%s3351_s29 + $0x128] sm:$0xff]  ;;  %v645_v48 = vld [vmem:[%s3351_s29 + $0x118] sm:$0xff]  ;;  %v2566_v50 = vpack.c.bf16 %v638_v42, %v634_v41  ;;  %p3083_p8 = pnand %p3082_p6, %p3076_p4 }
  0x66   : > { %v649_v49 = vld [vmem:[%s3351_s29 + $0x138] sm:$0xff]  ;;  %v2694_v51 = vpack.c.bf16 %v640_v45, %v636_v44  ;;  %v2568_v52 = vpack.c.bf16 %v647_v47, %v643_v46  ;;  %v642_v53 = vld [vmem:[%s3351_s29 + $0x100] sm:$0xff]  ;;  %v644_v55 = vld [vmem:[%s3351_s29 + $0x110] sm:$0xff] }
  0x67   : > { %2563 = vmatpush1.bf16.msra.mxu0 %v2562_v34  ;;  %v646_v54 = vld [vmem:[%s3351_s29 + $0x120] sm:$0xff]  ;;  %v2696_v56 = vpack.c.bf16 %v649_v49, %v645_v48  ;;  %v648_v57 = vld [vmem:[%s3351_s29 + $0x130] sm:$0xff]  ;;  %v651_v58 = vld [vmem:[%s3351_s29 + $0x148] sm:$0xff] }
  0x68   : > { %2691 = vmatpush1.bf16.msra.mxu1 %v2690_v38  ;;  %2565 = vmatprep.subr.bf16.mxu0 %v2564_v39  ;;  %v655_v59 = vld [vmem:[%s3351_s29 + $0x168] sm:$0xff]  ;;  %v653_v60 = vld [vmem:[%s3351_s29 + $0x158] sm:$0xff]  ;;  %v2570_v62 = vpack.c.bf16 %v646_v54, %v642_v53  ;;  %v2698_v63 = vpack.c.bf16 %v648_v57, %v644_v55  ;;  %v650_v1 = vld [vmem:[%s3351_s29 + $0x140] sm:$0xff] }
  0x69   : > { %2693 = vmatprep.subr.bf16.mxu1 %v2692_v43  ;;  %v657_v61 = vld [vmem:[%s3351_s29 + $0x178] sm:$0xff]  ;;  %v2572_v0 = vpack.c.bf16 %v655_v59, %v651_v58  ;;  %v654_v2 = vld [vmem:[%s3351_s29 + $0x160] sm:$0xff]  ;;  %v652_v3 = vld [vmem:[%s3351_s29 + $0x150] sm:$0xff] }
  0x6a   : > { %v2700_v4 = vpack.c.bf16 %v657_v61, %v653_v60  ;;  %v656_v5 = vld [vmem:[%s3351_s29 + $0x170] sm:$0xff]  ;;  %v659_v6 = vld [vmem:[%s3351_s29 + $0x188] sm:$0xff]  ;;  %v661_v8 = vld [vmem:[%s3351_s29 + $0x198] sm:$0xff]  ;;  %v2574_v10 = vpack.c.bf16 %v654_v2, %v650_v1 }
  0x6b   : > { %2567 = vmatpush1.bf16.msra.mxu0 %v2566_v50  ;;  %v663_v7 = vld [vmem:[%s3351_s29 + $0x1a8] sm:$0xff]  ;;  %v665_v9 = vld [vmem:[%s3351_s29 + $0x1b8] sm:$0xff]  ;;  %v2702_v11 = vpack.c.bf16 %v656_v5, %v652_v3  ;;  %v658_v13 = vld [vmem:[%s3351_s29 + $0x180] sm:$0xff] }
  0x6c   : > { %2695 = vmatpush1.bf16.msra.mxu1 %v2694_v51  ;;  %2569 = vmatprep.subr.bf16.mxu0 %v2568_v52  ;;  %v2576_v12 = vpack.c.bf16 %v663_v7, %v659_v6  ;;  %v662_v14 = vld [vmem:[%s3351_s29 + $0x1a0] sm:$0xff]  ;;  %v660_v15 = vld [vmem:[%s3351_s29 + $0x190] sm:$0xff]  ;;  %v2704_v16 = vpack.c.bf16 %v665_v9, %v661_v8  ;;  %v667_v18 = vld [vmem:[%s3351_s29 + $0x1c8] sm:$0xff] }
  0x6d   : > { %2697 = vmatprep.subr.bf16.mxu1 %v2696_v56  ;;  %v664_v17 = vld [vmem:[%s3351_s29 + $0x1b0] sm:$0xff]  ;;  %v671_v19 = vld [vmem:[%s3351_s29 + $0x1e8] sm:$0xff]  ;;  %v669_v20 = vld [vmem:[%s3351_s29 + $0x1d8] sm:$0xff]  ;;  %v2578_v22 = vpack.c.bf16 %v662_v14, %v658_v13 }
  0x6e   : > { %v673_v21 = vld [vmem:[%s3351_s29 + $0x1f8] sm:$0xff]  ;;  %v2706_v23 = vpack.c.bf16 %v664_v17, %v660_v15  ;;  %v2580_v24 = vpack.c.bf16 %v671_v19, %v667_v18  ;;  %v666_v25 = vld [vmem:[%s3351_s29 + $0x1c0] sm:$0xff]  ;;  %v668_v27 = vld [vmem:[%s3351_s29 + $0x1d0] sm:$0xff] }
  0x6f   : > { %2571 = vmatpush1.bf16.msra.mxu0 %v2570_v62  ;;  %v670_v26 = vld [vmem:[%s3351_s29 + $0x1e0] sm:$0xff]  ;;  %v2708_v28 = vpack.c.bf16 %v673_v21, %v669_v20  ;;  %v672_v29 = vld [vmem:[%s3351_s29 + $0x1f0] sm:$0xff]  ;;  %v675_v30 = vld [vmem:[%s3351_s29 + $0x208] sm:$0xff] }
  0x70   : > { %2699 = vmatpush1.bf16.msra.mxu1 %v2698_v63  ;;  %2573 = vmatprep.subr.bf16.mxu0 %v2572_v0  ;;  %v679_v31 = vld [vmem:[%s3351_s29 + $0x228] sm:$0xff]  ;;  %v677_v32 = vld [vmem:[%s3351_s29 + $0x218] sm:$0xff]  ;;  %v2582_v34 = vpack.c.bf16 %v670_v26, %v666_v25  ;;  %v2710_v35 = vpack.c.bf16 %v672_v29, %v668_v27  ;;  %v674_v37 = vld [vmem:[%s3351_s29 + $0x200] sm:$0xff] }
  0x71   : > { %2701 = vmatprep.subr.bf16.mxu1 %v2700_v4  ;;  %v681_v33 = vld [vmem:[%s3351_s29 + $0x238] sm:$0xff]  ;;  %v2584_v36 = vpack.c.bf16 %v679_v31, %v675_v30  ;;  %v678_v38 = vld [vmem:[%s3351_s29 + $0x220] sm:$0xff]  ;;  %v676_v39 = vld [vmem:[%s3351_s29 + $0x210] sm:$0xff] }
  0x72   : > { %v2712_v40 = vpack.c.bf16 %v681_v33, %v677_v32  ;;  %v680_v41 = vld [vmem:[%s3351_s29 + $0x230] sm:$0xff]  ;;  %v683_v42 = vld [vmem:[%s3351_s29 + $0x248] sm:$0xff]  ;;  %v685_v44 = vld [vmem:[%s3351_s29 + $0x258] sm:$0xff]  ;;  %v2586_v46 = vpack.c.bf16 %v678_v38, %v674_v37 }
  0x73   : > { %2575 = vmatpush1.bf16.msra.mxu0 %v2574_v10  ;;  %v687_v43 = vld [vmem:[%s3351_s29 + $0x268] sm:$0xff]  ;;  %v689_v45 = vld [vmem:[%s3351_s29 + $0x278] sm:$0xff]  ;;  %v2714_v47 = vpack.c.bf16 %v680_v41, %v676_v39  ;;  %v682_v49 = vld [vmem:[%s3351_s29 + $0x240] sm:$0xff] }
  0x74   : > { %2703 = vmatpush1.bf16.msra.mxu1 %v2702_v11  ;;  %2577 = vmatprep.subr.bf16.mxu0 %v2576_v12  ;;  %v2588_v48 = vpack.c.bf16 %v687_v43, %v683_v42  ;;  %v686_v50 = vld [vmem:[%s3351_s29 + $0x260] sm:$0xff]  ;;  %v684_v51 = vld [vmem:[%s3351_s29 + $0x250] sm:$0xff]  ;;  %v2716_v52 = vpack.c.bf16 %v689_v45, %v685_v44  ;;  %v691_v54 = vld [vmem:[%s3351_s29 + $0x288] sm:$0xff] }
  0x75   : > { %2705 = vmatprep.subr.bf16.mxu1 %v2704_v16  ;;  %v688_v53 = vld [vmem:[%s3351_s29 + $0x270] sm:$0xff]  ;;  %v695_v55 = vld [vmem:[%s3351_s29 + $0x2a8] sm:$0xff]  ;;  %v693_v56 = vld [vmem:[%s3351_s29 + $0x298] sm:$0xff]  ;;  %v2590_v58 = vpack.c.bf16 %v686_v50, %v682_v49 }
  0x76   : > { %v697_v57 = vld [vmem:[%s3351_s29 + $0x2b8] sm:$0xff]  ;;  %v2718_v59 = vpack.c.bf16 %v688_v53, %v684_v51  ;;  %v2592_v60 = vpack.c.bf16 %v695_v55, %v691_v54  ;;  %v690_v61 = vld [vmem:[%s3351_s29 + $0x280] sm:$0xff]  ;;  %v692_v63 = vld [vmem:[%s3351_s29 + $0x290] sm:$0xff] }
  0x77   : > { %2579 = vmatpush1.bf16.msra.mxu0 %v2578_v22  ;;  %v694_v62 = vld [vmem:[%s3351_s29 + $0x2a0] sm:$0xff]  ;;  %v2720_v0 = vpack.c.bf16 %v697_v57, %v693_v56  ;;  %v696_v1 = vld [vmem:[%s3351_s29 + $0x2b0] sm:$0xff]  ;;  %v699_v2 = vld [vmem:[%s3351_s29 + $0x2c8] sm:$0xff] }
  0x78   : > { %2707 = vmatpush1.bf16.msra.mxu1 %v2706_v23  ;;  %2581 = vmatprep.subr.bf16.mxu0 %v2580_v24  ;;  %v703_v3 = vld [vmem:[%s3351_s29 + $0x2e8] sm:$0xff]  ;;  %v701_v4 = vld [vmem:[%s3351_s29 + $0x2d8] sm:$0xff]  ;;  %v2594_v6 = vpack.c.bf16 %v694_v62, %v690_v61  ;;  %v698_v7 = vld [vmem:[%s3351_s29 + $0x2c0] sm:$0xff]  ;;  %v2722_v8 = vpack.c.bf16 %v696_v1, %v692_v63 }
  0x79   : > { %2709 = vmatprep.subr.bf16.mxu1 %v2708_v28  ;;  %v705_v5 = vld [vmem:[%s3351_s29 + $0x2f8] sm:$0xff]  ;;  %v2596_v9 = vpack.c.bf16 %v703_v3, %v699_v2  ;;  %v702_v10 = vld [vmem:[%s3351_s29 + $0x2e0] sm:$0xff]  ;;  %v700_v11 = vld [vmem:[%s3351_s29 + $0x2d0] sm:$0xff] }
  0x7a   : > { %v704_v12 = vld [vmem:[%s3351_s29 + $0x2f0] sm:$0xff]  ;;  %v2724_v13 = vpack.c.bf16 %v705_v5, %v701_v4  ;;  %v707_v14 = vld [vmem:[%s3351_s29 + $0x308] sm:$0xff]  ;;  %v709_v17 = vld [vmem:[%s3351_s29 + $0x318] sm:$0xff]  ;;  %v2598_v19 = vpack.c.bf16 %v702_v10, %v698_v7 }
  0x7b   : > { %2583 = vmatpush1.bf16.msra.mxu0 %v2582_v34  ;;  %v711_v15 = vld [vmem:[%s3351_s29 + $0x328] sm:$0xff]  ;;  %v713_v18 = vld [vmem:[%s3351_s29 + $0x338] sm:$0xff]  ;;  %v2726_v20 = vpack.c.bf16 %v704_v12, %v700_v11  ;;  %v706_v22 = vld [vmem:[%s3351_s29 + $0x300] sm:$0xff] }
  0x7c   : > { %2711 = vmatpush1.bf16.msra.mxu1 %v2710_v35  ;;  %2585 = vmatprep.subr.bf16.mxu0 %v2584_v36  ;;  %v483_v16 = vld [vmem:[#allocation3 + $0x8] sm:$0xff]  ;;  %v2600_v21 = vpack.c.bf16 %v711_v15, %v707_v14  ;;  %v710_v23 = vld [vmem:[%s3351_s29 + $0x320] sm:$0xff]  ;;  %v708_v24 = vld [vmem:[%s3351_s29 + $0x310] sm:$0xff]  ;;  %v2728_v25 = vpack.c.bf16 %v713_v18, %v709_v17 }
  0x7d   : > { %2713 = vmatprep.subr.bf16.mxu1 %v2712_v40  ;;  %930 = vmatprep.mubr.f32.mxu0 %v483_v16  ;;  %v712_v26 = vld [vmem:[%s3351_s29 + $0x330] sm:$0xff]  ;;  %v715_v27 = vld [vmem:[%s3351_s29 + $0x348] sm:$0xff]  ;;  %v717_v29 = vld [vmem:[%s3351_s29 + $0x358] sm:$0xff]  ;;  %v2602_v31 = vpack.c.bf16 %v710_v23, %v706_v22 }
  0x7e   : > { %1444 = vmatprep.mubr.f32.mxu1 %v483_v16  ;;  %v719_v28 = vld [vmem:[%s3351_s29 + $0x368] sm:$0xff]  ;;  %v721_v30 = vld [vmem:[%s3351_s29 + $0x378] sm:$0xff]  ;;  %v2730_v32 = vpack.c.bf16 %v712_v26, %v708_v24  ;;  %v714_v34 = vld [vmem:[%s3351_s29 + $0x340] sm:$0xff] }
  0x7f   : > { %2587 = vmatpush1.bf16.msra.mxu0 %v2586_v46  ;;  %v2604_v33 = vpack.c.bf16 %v719_v28, %v715_v27  ;;  %v718_v35 = vld [vmem:[%s3351_s29 + $0x360] sm:$0xff]  ;;  %v716_v36 = vld [vmem:[%s3351_s29 + $0x350] sm:$0xff]  ;;  %v2732_v37 = vpack.c.bf16 %v721_v30, %v717_v29  ;;  %v723_v39 = vld [vmem:[%s3351_s29 + $0x388] sm:$0xff] }
  0x80   : > { %2715 = vmatpush1.bf16.msra.mxu1 %v2714_v47  ;;  %2589 = vmatprep.subr.bf16.mxu0 %v2588_v48  ;;  %v720_v38 = vld [vmem:[%s3351_s29 + $0x370] sm:$0xff]  ;;  %v727_v40 = vld [vmem:[%s3351_s29 + $0x3a8] sm:$0xff]  ;;  %v725_v41 = vld [vmem:[%s3351_s29 + $0x398] sm:$0xff]  ;;  %v2606_v43 = vpack.c.bf16 %v718_v35, %v714_v34 }
  0x81   : > { %2717 = vmatprep.subr.bf16.mxu1 %v2716_v52  ;;  %v729_v42 = vld [vmem:[%s3351_s29 + $0x3b8] sm:$0xff]  ;;  %v2734_v44 = vpack.c.bf16 %v720_v38, %v716_v36  ;;  %v2608_v45 = vpack.c.bf16 %v727_v40, %v723_v39  ;;  %v722_v46 = vld [vmem:[%s3351_s29 + $0x380] sm:$0xff]  ;;  %v724_v48 = vld [vmem:[%s3351_s29 + $0x390] sm:$0xff] }
  0x82   : > { %v726_v47 = vld [vmem:[%s3351_s29 + $0x3a0] sm:$0xff]  ;;  %v2736_v49 = vpack.c.bf16 %v729_v42, %v725_v41  ;;  %v728_v50 = vld [vmem:[%s3351_s29 + $0x3b0] sm:$0xff]  ;;  %v731_v51 = vld [vmem:[%s3351_s29 + $0x3c8] sm:$0xff] }
  0x83   : > { %2591 = vmatpush1.bf16.msra.mxu0 %v2590_v58  ;;  %v735_v52 = vld [vmem:[%s3351_s29 + $0x3e8] sm:$0xff]  ;;  %v733_v53 = vld [vmem:[%s3351_s29 + $0x3d8] sm:$0xff]  ;;  %v2610_v55 = vpack.c.bf16 %v726_v47, %v722_v46  ;;  %v2738_v56 = vpack.c.bf16 %v728_v50, %v724_v48  ;;  %v730_v58 = vld [vmem:[%s3351_s29 + $0x3c0] sm:$0xff] }
  0x84   : > { %2719 = vmatpush1.bf16.msra.mxu1 %v2718_v59  ;;  %2593 = vmatprep.subr.bf16.mxu0 %v2592_v60  ;;  %v737_v54 = vld [vmem:[%s3351_s29 + $0x3f8] sm:$0xff]  ;;  %v2612_v57 = vpack.c.bf16 %v735_v52, %v731_v51  ;;  %v734_v59 = vld [vmem:[%s3351_s29 + $0x3e0] sm:$0xff]  ;;  %v732_v60 = vld [vmem:[%s3351_s29 + $0x3d0] sm:$0xff] }
  0x85   : > { %2721 = vmatprep.subr.bf16.mxu1 %v2720_v0  ;;  %v2740_v61 = vpack.c.bf16 %v737_v54, %v733_v53  ;;  %v736_v62 = vld [vmem:[%s3351_s29 + $0x3f0] sm:$0xff]  ;;  %v739_v63 = vld [vmem:[%s3351_s29 + $0x408] sm:$0xff]  ;;  %v741_v1 = vld [vmem:[%s3351_s29 + $0x418] sm:$0xff]  ;;  %v2614_v3 = vpack.c.bf16 %v734_v59, %v730_v58 }
  0x86   : > { %v743_v0 = vld [vmem:[%s3351_s29 + $0x428] sm:$0xff]  ;;  %v745_v2 = vld [vmem:[%s3351_s29 + $0x438] sm:$0xff]  ;;  %v2742_v4 = vpack.c.bf16 %v736_v62, %v732_v60  ;;  %v742_v7 = vld [vmem:[%s3351_s29 + $0x420] sm:$0xff] }
  0x87   : > { %2595 = vmatpush1.bf16.msra.mxu0 %v2594_v6  ;;  %v2616_v5 = vpack.c.bf16 %v743_v0, %v739_v63  ;;  %v738_v6 = vld [vmem:[%s3351_s29 + $0x400] sm:$0xff]  ;;  %v744_v10 = vld [vmem:[%s3351_s29 + $0x430] sm:$0xff]  ;;  %v747_v11 = vld [vmem:[%s3351_s29 + $0x448] sm:$0xff] }
  0x88   : > { %2723 = vmatpush1.bf16.msra.mxu1 %v2722_v8  ;;  %2597 = vmatprep.subr.bf16.mxu0 %v2596_v9  ;;  %v2744_v8 = vpack.c.bf16 %v745_v2, %v741_v1  ;;  %v740_v9 = vld [vmem:[%s3351_s29 + $0x410] sm:$0xff]  ;;  %v751_v12 = vld [vmem:[%s3351_s29 + $0x468] sm:$0xff]  ;;  %v2618_v14 = vpack.c.bf16 %v742_v7, %v738_v6  ;;  %v749_v15 = vld [vmem:[%s3351_s29 + $0x458] sm:$0xff] }
  0x89   : > { %2725 = vmatprep.subr.bf16.mxu1 %v2724_v13  ;;  %v482_v13 = vld [vmem:[#allocation3] sm:$0xff]  ;;  %v753_v16 = vld [vmem:[%s3351_s29 + $0x478] sm:$0xff]  ;;  %v2746_v17 = vpack.c.bf16 %v744_v10, %v740_v9  ;;  %v487_v18 = vld [vmem:[#allocation3 + $0x28] sm:$0xff] }
  0x8a   : > { %v748_v22 = vld [vmem:[%s3351_s29 + $0x450] sm:$0xff]  ;;  %v2748_v23 = vpack.c.bf16 %v753_v16, %v749_v15  ;;  %v759_v26 = vld [vmem:[%s3351_s29 + $0x4a8] sm:$0xff]  ;;  %v486_v27 = vld [vmem:[#allocation3 + $0x20] sm:$0xff] }
  0x8b   : > { %2599 = vmatpush1.bf16.msra.mxu0 %v2598_v19  ;;  %v2620_v19 = vpack.c.bf16 %v751_v12, %v747_v11  ;;  %v752_v24 = vld [vmem:[%s3351_s29 + $0x470] sm:$0xff]  ;;  %v757_v28 = vld [vmem:[%s3351_s29 + $0x498] sm:$0xff]  ;;  %v491_v30 = vld [vmem:[#allocation3 + $0x48] sm:$0xff] }
  0x8c   : > { %2727 = vmatpush1.bf16.msra.mxu1 %v2726_v20  ;;  %2601 = vmatprep.subr.bf16.mxu0 %v2600_v21  ;;  %v746_v20 = vld [vmem:[%s3351_s29 + $0x440] sm:$0xff]  ;;  %v761_v29 = vld [vmem:[%s3351_s29 + $0x4b8] sm:$0xff]  ;;  %v756_v36 = vld [vmem:[%s3351_s29 + $0x490] sm:$0xff] }
  0x8d   : > { %2729 = vmatprep.subr.bf16.mxu1 %v2728_v25  ;;  %v750_v21 = vld [vmem:[%s3351_s29 + $0x460] sm:$0xff]  ;;  %v755_v25 = vld [vmem:[%s3351_s29 + $0x488] sm:$0xff]  ;;  %v760_v38 = vld [vmem:[%s3351_s29 + $0x4b0] sm:$0xff] }
  0x8e   : > { %v754_v34 = vld [vmem:[%s3351_s29 + $0x480] sm:$0xff]  ;;  %v763_v39 = vld [vmem:[%s3351_s29 + $0x4c8] sm:$0xff]  ;;  %v765_v42 = vld [vmem:[%s3351_s29 + $0x4d8] sm:$0xff]  ;;  %v2754_v46 = vpack.c.bf16 %v760_v38, %v756_v36 }
  0x8f   : > { %2603 = vmatpush1.bf16.msra.mxu0 %v2602_v31  ;;  %v2622_v31 = vpack.c.bf16 %v750_v21, %v746_v20  ;;  %v758_v35 = vld [vmem:[%s3351_s29 + $0x4a0] sm:$0xff]  ;;  %v767_v40 = vld [vmem:[%s3351_s29 + $0x4e8] sm:$0xff]  ;;  %v764_v50 = vld [vmem:[%s3351_s29 + $0x4d0] sm:$0xff] }
  0x90   : > { %2731 = vmatpush1.bf16.msra.mxu1 %v2730_v32  ;;  %2605 = vmatprep.subr.bf16.mxu0 %v2604_v33  ;;  %v2750_v32 = vpack.c.bf16 %v752_v24, %v748_v22  ;;  %v2624_v33 = vpack.c.bf16 %v759_v26, %v755_v25  ;;  %v490_v41 = vld [vmem:[#allocation3 + $0x40] sm:$0xff]  ;;  %v2628_v47 = vpack.c.bf16 %v767_v40, %v763_v39  ;;  %v768_v52 = vld [vmem:[%s3351_s29 + $0x4f0] sm:$0xff]  ;;  %v771_v53 = vld [vmem:[%s3351_s29 + $0x508] sm:$0xff] }
  0x91   : > { %2733 = vmatprep.subr.bf16.mxu1 %v2732_v37  ;;  %v2752_v37 = vpack.c.bf16 %v761_v29, %v757_v28  ;;  %v762_v48 = vld [vmem:[%s3351_s29 + $0x4c0] sm:$0xff]  ;;  %v775_v54 = vld [vmem:[%s3351_s29 + $0x528] sm:$0xff]  ;;  %v2758_v60 = vpack.c.bf16 %v768_v52, %v764_v50  ;;  %v772_v0 = vld [vmem:[%s3351_s29 + $0x510] sm:$0xff] }
  0x92   : > { %v499_v58 = vld [vmem:[#allocation3 + $0x88] sm:$0xff]  ;;  %v770_v62 = vld [vmem:[%s3351_s29 + $0x500] sm:$0xff]  ;;  %v776_v2 = vld [vmem:[%s3351_s29 + $0x530] sm:$0xff] }
  0x93   : > { %2607 = vmatpush1.bf16.msra.mxu0 %v2606_v43  ;;  %v769_v43 = vld [vmem:[%s3351_s29 + $0x4f8] sm:$0xff]  ;;  %v774_v63 = vld [vmem:[%s3351_s29 + $0x520] sm:$0xff]  ;;  %v2762_v10 = vpack.c.bf16 %v776_v2, %v772_v0  ;;  %v784_v16 = vld [vmem:[%s3351_s29 + $0x570] sm:$0xff] }
  0x94   : > { %2735 = vmatpush1.bf16.msra.mxu1 %v2734_v44  ;;  %2609 = vmatprep.subr.bf16.mxu0 %v2608_v45  ;;  %v495_v44 = vld [vmem:[#allocation3 + $0x68] sm:$0xff]  ;;  %v2626_v45 = vpack.c.bf16 %v758_v35, %v754_v34  ;;  %v2756_v51 = vpack.c.bf16 %v769_v43, %v765_v42  ;;  %v781_v6 = vld [vmem:[%s3351_s29 + $0x558] sm:$0xff]  ;;  %v2634_v9 = vpack.c.bf16 %v774_v63, %v770_v62  ;;  %v778_v12 = vld [vmem:[%s3351_s29 + $0x540] sm:$0xff] }
  0x95   : > { %2737 = vmatprep.subr.bf16.mxu1 %v2736_v49  ;;  %v766_v49 = vld [vmem:[%s3351_s29 + $0x4e0] sm:$0xff]  ;;  %v785_v7 = vld [vmem:[%s3351_s29 + $0x578] sm:$0xff]  ;;  %v507_v22 = vld [vmem:[#allocation3 + $0xc8] sm:$0xff] }
  0x96   : > { %v2630_v59 = vpack.c.bf16 %v766_v49, %v762_v48  ;;  %v2764_v15 = vpack.c.bf16 %v785_v7, %v781_v6  ;;  %v789_v20 = vld [vmem:[%s3351_s29 + $0x598] sm:$0xff]  ;;  %v786_v26 = vld [vmem:[%s3351_s29 + $0x580] sm:$0xff]  ;;  %v788_v28 = vld [vmem:[%s3351_s29 + $0x590] sm:$0xff] }
  0x97   : > { %2611 = vmatpush1.bf16.msra.mxu0 %v2610_v55  ;;  %v494_v55 = vld [vmem:[#allocation3 + $0x60] sm:$0xff]  ;;  %v793_v21 = vld [vmem:[%s3351_s29 + $0x5b8] sm:$0xff]  ;;  %v511_v36 = vld [vmem:[#allocation3 + $0xe8] sm:$0xff] }
  0x98   : > { %2739 = vmatpush1.bf16.msra.mxu1 %v2738_v56  ;;  %2613 = vmatprep.subr.bf16.mxu0 %v2612_v57  ;;  %v773_v56 = vld [vmem:[%s3351_s29 + $0x518] sm:$0xff]  ;;  %v2768_v29 = vpack.c.bf16 %v793_v21, %v789_v20  ;;  %v794_v40 = vld [vmem:[%s3351_s29 + $0x5c0] sm:$0xff]  ;;  %v796_v42 = vld [vmem:[%s3351_s29 + $0x5d0] sm:$0xff] }
  0x99   : > { %2741 = vmatprep.subr.bf16.mxu1 %v2740_v61  ;;  %v777_v57 = vld [vmem:[%s3351_s29 + $0x538] sm:$0xff]  ;;  %v2632_v61 = vpack.c.bf16 %v775_v54, %v771_v53  ;;  %v515_v50 = vld [vmem:[#allocation3 + $0x108] sm:$0xff]  ;;  %v802_v54 = vld [vmem:[%s3351_s29 + $0x600] sm:$0xff] }
  0x9a   : > { %v2760_v1 = vpack.c.bf16 %v777_v57, %v773_v56  ;;  %v797_v34 = vld [vmem:[%s3351_s29 + $0x5d8] sm:$0xff]  ;;  %v804_v56 = vld [vmem:[%s3351_s29 + $0x610] sm:$0xff]  ;;  %v519_v0 = vld [vmem:[#allocation3 + $0x128] sm:$0xff] }
  0x9b   : > { %2615 = vmatpush1.bf16.msra.mxu0 %v2614_v3  ;;  %v779_v3 = vld [vmem:[%s3351_s29 + $0x548] sm:$0xff]  ;;  %v801_v35 = vld [vmem:[%s3351_s29 + $0x5f8] sm:$0xff]  ;;  %v812_v6 = vld [vmem:[%s3351_s29 + $0x650] sm:$0xff] }
  0x9c   : > { %2743 = vmatpush1.bf16.msra.mxu1 %v2742_v4  ;;  %2617 = vmatprep.subr.bf16.mxu0 %v2616_v5  ;;  %v783_v4 = vld [vmem:[%s3351_s29 + $0x568] sm:$0xff]  ;;  %v498_v5 = vld [vmem:[#allocation3 + $0x80] sm:$0xff]  ;;  %v2772_v43 = vpack.c.bf16 %v801_v35, %v797_v34  ;;  %v805_v48 = vld [vmem:[%s3351_s29 + $0x618] sm:$0xff] }
  0x9d   : > { %2745 = vmatprep.subr.bf16.mxu1 %v2744_v8  ;;  %v503_v8 = vld [vmem:[#allocation3 + $0xa8] sm:$0xff]  ;;  %v2636_v11 = vpack.c.bf16 %v783_v4, %v779_v3  ;;  %v809_v49 = vld [vmem:[%s3351_s29 + $0x638] sm:$0xff]  ;;  %v810_v4 = vld [vmem:[%s3351_s29 + $0x640] sm:$0xff] }
  0x9e   : > { %931 = vmatmul.mubr.f32.vlgmr.msra.gmra.mrb[0].mxu0 %v482_v13  ;;  %v2776_v57 = vpack.c.bf16 %v809_v49, %v805_v48  ;;  %v813_v62 = vld [vmem:[%s3351_s29 + $0x658] sm:$0xff]  ;;  %v820_v20 = vld [vmem:[%s3351_s29 + $0x690] sm:$0xff] }
  0x9f   : > { %1445 = vmatmul.mubr.f32.vlgmr.msra.gmra.mrb[0].mxu1 %v482_v13  ;;  %2619 = vmatpush1.bf16.msra.mxu0 %v2618_v14  ;;  %v782_v13 = vld [vmem:[%s3351_s29 + $0x560] sm:$0xff]  ;;  %v780_v14 = vld [vmem:[%s3351_s29 + $0x550] sm:$0xff]  ;;  %v817_v63 = vld [vmem:[%s3351_s29 + $0x678] sm:$0xff] }
  0xa0   : > { %2747 = vmatpush1.bf16.msra.mxu1 %v2746_v17  ;;  %936 = vmatprep.mubr.f32.mxu0 %v487_v18  ;;  %v787_v17 = vld [vmem:[%s3351_s29 + $0x588] sm:$0xff]  ;;  %v2766_v24 = vpack.c.bf16 %v784_v16, %v780_v14  ;;  %v2780_v7 = vpack.c.bf16 %v817_v63, %v813_v62  ;;  %v828_v34 = vld [vmem:[%s3351_s29 + $0x6d0] sm:$0xff] }
  0xa1   : > { %1450 = vmatprep.mubr.f32.mxu1 %v487_v18  ;;  %2621 = vmatprep.subr.bf16.mxu0 %v2620_v19  ;;  %v791_v18 = vld [vmem:[%s3351_s29 + $0x5a8] sm:$0xff]  ;;  %v502_v19 = vld [vmem:[#allocation3 + $0xa0] sm:$0xff]  ;;  %v836_v48 = vld [vmem:[%s3351_s29 + $0x710] sm:$0xff] }
  0xa2   : > { %937 = vmatmul.mubr.f32.gmra.mrb[2].mxu0 %v486_v27  ;;  %2749 = vmatprep.subr.bf16.mxu1 %v2748_v23  ;;  %v2638_v23 = vpack.c.bf16 %v782_v13, %v778_v12  ;;  %v2640_v25 = vpack.c.bf16 %v791_v18, %v787_v17  ;;  %v821_v12 = vld [vmem:[%s3351_s29 + $0x698] sm:$0xff]  ;;  %v523_v14 = vld [vmem:[#allocation3 + $0x148] sm:$0xff]  ;;  %v818_v18 = vld [vmem:[%s3351_s29 + $0x680] sm:$0xff] }
  0xa3   : > { %1451 = vmatmul.mubr.f32.gmra.mrb[2].mxu1 %v486_v27  ;;  %942 = vmatprep.mubr.f32.mxu0 %v491_v30  ;;  %v790_v27 = vld [vmem:[%s3351_s29 + $0x5a0] sm:$0xff]  ;;  %v825_v13 = vld [vmem:[%s3351_s29 + $0x6b8] sm:$0xff]  ;;  %v844_v62 = vld [vmem:[%s3351_s29 + $0x750] sm:$0xff] }
  0xa4   : > { %1456 = vmatprep.mubr.f32.mxu1 %v491_v30  ;;  %2623 = vmatpush1.bf16.msra.mxu0 %v2622_v31  ;;  %v792_v30 = vld [vmem:[%s3351_s29 + $0x5b0] sm:$0xff]  ;;  %v795_v31 = vld [vmem:[%s3351_s29 + $0x5c8] sm:$0xff]  ;;  %v2784_v21 = vpack.c.bf16 %v825_v13, %v821_v12 }
  0xa5   : > { %2751 = vmatpush1.bf16.msra.mxu1 %v2750_v32  ;;  %2625 = vmatprep.subr.bf16.mxu0 %v2624_v33  ;;  %v799_v32 = vld [vmem:[%s3351_s29 + $0x5e8] sm:$0xff]  ;;  %v506_v33 = vld [vmem:[#allocation3 + $0xc0] sm:$0xff]  ;;  %v2770_v38 = vpack.c.bf16 %v792_v30, %v788_v28  ;;  %v852_v12 = vld [vmem:[%s3351_s29 + $0x790] sm:$0xff] }
  0xa6   : > { %943 = vmatmul.mubr.f32.gmra.mrb[4].mxu0 %v490_v41  ;;  %2753 = vmatprep.subr.bf16.mxu1 %v2752_v37  ;;  %v2642_v37 = vpack.c.bf16 %v790_v27, %v786_v26  ;;  %v2644_v39 = vpack.c.bf16 %v799_v32, %v795_v31  ;;  %v829_v26 = vld [vmem:[%s3351_s29 + $0x6d8] sm:$0xff]  ;;  %v527_v28 = vld [vmem:[#allocation3 + $0x168] sm:$0xff]  ;;  %v826_v32 = vld [vmem:[%s3351_s29 + $0x6c0] sm:$0xff] }
  0xa7   : > { %1457 = vmatmul.mubr.f32.gmra.mrb[4].mxu1 %v490_v41  ;;  %948 = vmatprep.mubr.f32.mxu0 %v495_v44  ;;  %v798_v41 = vld [vmem:[%s3351_s29 + $0x5e0] sm:$0xff]  ;;  %v833_v27 = vld [vmem:[%s3351_s29 + $0x6f8] sm:$0xff] }
  0xa8   : > { %1462 = vmatprep.mubr.f32.mxu1 %v495_v44  ;;  %2627 = vmatpush1.bf16.msra.mxu0 %v2626_v45  ;;  %v800_v44 = vld [vmem:[%s3351_s29 + $0x5f0] sm:$0xff]  ;;  %v803_v45 = vld [vmem:[%s3351_s29 + $0x608] sm:$0xff]  ;;  %v2788_v35 = vpack.c.bf16 %v833_v27, %v829_v26 }
  0xa9   : > { %2755 = vmatpush1.bf16.msra.mxu1 %v2754_v46  ;;  %2629 = vmatprep.subr.bf16.mxu0 %v2628_v47  ;;  %v807_v46 = vld [vmem:[%s3351_s29 + $0x628] sm:$0xff]  ;;  %v510_v47 = vld [vmem:[#allocation3 + $0xe0] sm:$0xff]  ;;  %v2774_v52 = vpack.c.bf16 %v800_v44, %v796_v42  ;;  %v860_v27 = vld [vmem:[%s3351_s29 + $0x7d0] sm:$0xff] }
  0xaa   : > { %949 = vmatmul.mubr.f32.gmra.mrb[6].mxu0 %v494_v55  ;;  %2757 = vmatprep.subr.bf16.mxu1 %v2756_v51  ;;  %v2646_v51 = vpack.c.bf16 %v798_v41, %v794_v40  ;;  %v2648_v53 = vpack.c.bf16 %v807_v46, %v803_v45  ;;  %v837_v40 = vld [vmem:[%s3351_s29 + $0x718] sm:$0xff]  ;;  %v531_v42 = vld [vmem:[#allocation3 + $0x188] sm:$0xff]  ;;  %v834_v46 = vld [vmem:[%s3351_s29 + $0x700] sm:$0xff] }
  0xab   : > { %1463 = vmatmul.mubr.f32.gmra.mrb[6].mxu1 %v494_v55  ;;  %954 = vmatprep.mubr.f32.mxu0 %v499_v58  ;;  %v806_v55 = vld [vmem:[%s3351_s29 + $0x620] sm:$0xff]  ;;  %v841_v41 = vld [vmem:[%s3351_s29 + $0x738] sm:$0xff] }
  0xac   : > { %1468 = vmatprep.mubr.f32.mxu1 %v499_v58  ;;  %2631 = vmatpush1.bf16.msra.mxu0 %v2630_v59  ;;  %v808_v58 = vld [vmem:[%s3351_s29 + $0x630] sm:$0xff]  ;;  %v811_v59 = vld [vmem:[%s3351_s29 + $0x648] sm:$0xff]  ;;  %v2792_v49 = vpack.c.bf16 %v841_v41, %v837_v40  ;;  %v562_v41 = vld [vmem:[#allocation3 + $0x280] sm:$0xff] }
  0xad   : > { %2759 = vmatpush1.bf16.msra.mxu1 %v2758_v60  ;;  %2633 = vmatprep.subr.bf16.mxu0 %v2632_v61  ;;  %v815_v60 = vld [vmem:[%s3351_s29 + $0x668] sm:$0xff]  ;;  %v514_v61 = vld [vmem:[#allocation3 + $0x100] sm:$0xff]  ;;  %v2778_v2 = vpack.c.bf16 %v808_v58, %v804_v56 }
  0xae   : > { %955 = vmatmul.mubr.f32.gmra.mrb[8].mxu0 %v498_v5  ;;  %2761 = vmatprep.subr.bf16.mxu1 %v2760_v1  ;;  %v2650_v1 = vpack.c.bf16 %v806_v55, %v802_v54  ;;  %v2652_v3 = vpack.c.bf16 %v815_v60, %v811_v59  ;;  %v845_v54 = vld [vmem:[%s3351_s29 + $0x758] sm:$0xff]  ;;  %v535_v56 = vld [vmem:[#allocation3 + $0x1a8] sm:$0xff]  ;;  %v842_v60 = vld [vmem:[%s3351_s29 + $0x740] sm:$0xff] }
  0xaf   : > { %1469 = vmatmul.mubr.f32.gmra.mrb[8].mxu1 %v498_v5  ;;  %960 = vmatprep.mubr.f32.mxu0 %v503_v8  ;;  %v814_v5 = vld [vmem:[%s3351_s29 + $0x660] sm:$0xff]  ;;  %v849_v55 = vld [vmem:[%s3351_s29 + $0x778] sm:$0xff]  ;;  %v563_v40 = vld [vmem:[#allocation3 + $0x288] sm:$0xff] }
  0xb0   : > { %1474 = vmatprep.mubr.f32.mxu1 %v503_v8  ;;  %2635 = vmatpush1.bf16.msra.mxu0 %v2634_v9  ;;  %v816_v8 = vld [vmem:[%s3351_s29 + $0x670] sm:$0xff]  ;;  %v819_v9 = vld [vmem:[%s3351_s29 + $0x688] sm:$0xff]  ;;  %v2796_v63 = vpack.c.bf16 %v849_v55, %v845_v54  ;;  %v590_v55 = vld [vmem:[#allocation3 + $0x360] sm:$0xff] }
  0xb1   : > { %2763 = vmatpush1.bf16.msra.mxu1 %v2762_v10  ;;  %2637 = vmatprep.subr.bf16.mxu0 %v2636_v11  ;;  %v823_v10 = vld [vmem:[%s3351_s29 + $0x6a8] sm:$0xff]  ;;  %v518_v11 = vld [vmem:[#allocation3 + $0x120] sm:$0xff]  ;;  %v2782_v16 = vpack.c.bf16 %v816_v8, %v812_v6 }
  0xb2   : > { %961 = vmatmul.mubr.f32.gmra.mrb[10].mxu0 %v502_v19  ;;  %2765 = vmatprep.subr.bf16.mxu1 %v2764_v15  ;;  %v2654_v15 = vpack.c.bf16 %v814_v5, %v810_v4  ;;  %v2656_v17 = vpack.c.bf16 %v823_v10, %v819_v9  ;;  %v853_v4 = vld [vmem:[%s3351_s29 + $0x798] sm:$0xff]  ;;  %v539_v6 = vld [vmem:[#allocation3 + $0x1c8] sm:$0xff]  ;;  %v850_v10 = vld [vmem:[%s3351_s29 + $0x780] sm:$0xff] }
  0xb3   : > { %1475 = vmatmul.mubr.f32.gmra.mrb[10].mxu1 %v502_v19  ;;  %966 = vmatprep.mubr.f32.mxu0 %v507_v22  ;;  %v822_v19 = vld [vmem:[%s3351_s29 + $0x6a0] sm:$0xff]  ;;  %v857_v5 = vld [vmem:[%s3351_s29 + $0x7b8] sm:$0xff]  ;;  %v591_v54 = vld [vmem:[#allocation3 + $0x368] sm:$0xff] }
  0xb4   : > { %1480 = vmatprep.mubr.f32.mxu1 %v507_v22  ;;  %2639 = vmatpush1.bf16.msra.mxu0 %v2638_v23  ;;  %v824_v22 = vld [vmem:[%s3351_s29 + $0x6b0] sm:$0xff]  ;;  %v827_v23 = vld [vmem:[%s3351_s29 + $0x6c8] sm:$0xff]  ;;  %v2800_v13 = vpack.c.bf16 %v857_v5, %v853_v4  ;;  %v493_v4 = vld [vmem:[#allocation3 + $0x58] sm:$0xff] }
  0xb5   : > { %2767 = vmatpush1.bf16.msra.mxu1 %v2766_v24  ;;  %2641 = vmatprep.subr.bf16.mxu0 %v2640_v25  ;;  %v831_v24 = vld [vmem:[%s3351_s29 + $0x6e8] sm:$0xff]  ;;  %v522_v25 = vld [vmem:[#allocation3 + $0x140] sm:$0xff]  ;;  %v2786_v30 = vpack.c.bf16 %v824_v22, %v820_v20  ;;  %v492_v5 = vld [vmem:[#allocation3 + $0x50] sm:$0xff] }
  0xb6   : > { %967 = vmatmul.mubr.f32.gmra.mrb[12].mxu0 %v506_v33  ;;  %2769 = vmatprep.subr.bf16.mxu1 %v2768_v29  ;;  %v2658_v29 = vpack.c.bf16 %v822_v19, %v818_v18  ;;  %v2660_v31 = vpack.c.bf16 %v831_v24, %v827_v23  ;;  %v861_v18 = vld [vmem:[%s3351_s29 + $0x7d8] sm:$0xff]  ;;  %v543_v20 = vld [vmem:[#allocation3 + $0x1e8] sm:$0xff]  ;;  %v858_v24 = vld [vmem:[%s3351_s29 + $0x7c0] sm:$0xff] }
  0xb7   : > { %1481 = vmatmul.mubr.f32.gmra.mrb[12].mxu1 %v506_v33  ;;  %972 = vmatprep.mubr.f32.mxu0 %v511_v36  ;;  %v830_v33 = vld [vmem:[%s3351_s29 + $0x6e0] sm:$0xff]  ;;  %v865_v19 = vld [vmem:[%s3351_s29 + $0x7f8] sm:$0xff] }
  0xb8   : > { %1486 = vmatprep.mubr.f32.mxu1 %v511_v36  ;;  %2643 = vmatpush1.bf16.msra.mxu0 %v2642_v37  ;;  %v832_v36 = vld [vmem:[%s3351_s29 + $0x6f0] sm:$0xff]  ;;  %v835_v37 = vld [vmem:[%s3351_s29 + $0x708] sm:$0xff]  ;;  %v2804_v26 = vpack.c.bf16 %v865_v19, %v861_v18  ;;  %v521_v18 = vld [vmem:[#allocation3 + $0x138] sm:$0xff] }
  0xb9   : > { %2771 = vmatpush1.bf16.msra.mxu1 %v2770_v38  ;;  %2645 = vmatprep.subr.bf16.mxu0 %v2644_v39  ;;  %v839_v38 = vld [vmem:[%s3351_s29 + $0x728] sm:$0xff]  ;;  %v526_v39 = vld [vmem:[#allocation3 + $0x160] sm:$0xff]  ;;  %v2790_v44 = vpack.c.bf16 %v832_v36, %v828_v34  ;;  %v520_v19 = vld [vmem:[#allocation3 + $0x130] sm:$0xff] }
  0xba   : > { %973 = vmatmul.mubr.f32.gmra.mrb[14].mxu0 %v510_v47  ;;  %2773 = vmatprep.subr.bf16.mxu1 %v2772_v43  ;;  %v2662_v43 = vpack.c.bf16 %v830_v33, %v826_v32  ;;  %v2664_v45 = vpack.c.bf16 %v839_v38, %v835_v37  ;;  %v546_v33 = vld [vmem:[#allocation3 + $0x200] sm:$0xff]  ;;  %v551_v34 = vld [vmem:[#allocation3 + $0x228] sm:$0xff] }
  0xbb   : > { %1487 = vmatmul.mubr.f32.gmra.mrb[14].mxu1 %v510_v47  ;;  %978 = vmatprep.mubr.f32.mxu0 %v515_v50  ;;  %v838_v47 = vld [vmem:[%s3351_s29 + $0x720] sm:$0xff]  ;;  %v555_v36 = vld [vmem:[#allocation3 + $0x248] sm:$0xff] }
  0xbc   : > { %1492 = vmatprep.mubr.f32.mxu1 %v515_v50  ;;  %2647 = vmatpush1.bf16.msra.mxu0 %v2646_v51  ;;  %v840_v50 = vld [vmem:[%s3351_s29 + $0x730] sm:$0xff]  ;;  %v843_v51 = vld [vmem:[%s3351_s29 + $0x748] sm:$0xff]  ;;  %v554_v37 = vld [vmem:[#allocation3 + $0x240] sm:$0xff] }
  0xbd   : > { %2775 = vmatpush1.bf16.msra.mxu1 %v2774_v52  ;;  %2649 = vmatprep.subr.bf16.mxu0 %v2648_v53  ;;  %v847_v52 = vld [vmem:[%s3351_s29 + $0x768] sm:$0xff]  ;;  %v530_v53 = vld [vmem:[#allocation3 + $0x180] sm:$0xff]  ;;  %v2794_v58 = vpack.c.bf16 %v840_v50, %v836_v48 }
  0xbe   : > { %979 = vmatmul.mubr.f32.gmra.mrb[16].mxu0 %v514_v61  ;;  %2777 = vmatprep.subr.bf16.mxu1 %v2776_v57  ;;  %v2666_v57 = vpack.c.bf16 %v838_v47, %v834_v46  ;;  %v2668_v59 = vpack.c.bf16 %v847_v52, %v843_v51  ;;  %v559_v38 = vld [vmem:[#allocation3 + $0x268] sm:$0xff]  ;;  %v574_v47 = vld [vmem:[#allocation3 + $0x2e0] sm:$0xff] }
  0xbf   : > { %1493 = vmatmul.mubr.f32.gmra.mrb[16].mxu1 %v514_v61  ;;  %984 = vmatprep.mubr.f32.mxu0 %v519_v0  ;;  %v846_v61 = vld [vmem:[%s3351_s29 + $0x760] sm:$0xff]  ;;  %v575_v46 = vld [vmem:[#allocation3 + $0x2e8] sm:$0xff] }
  0xc0   : > { %1498 = vmatprep.mubr.f32.mxu1 %v519_v0  ;;  %2651 = vmatpush1.bf16.msra.mxu0 %v2650_v1  ;;  %v848_v0 = vld [vmem:[%s3351_s29 + $0x770] sm:$0xff]  ;;  %v851_v1 = vld [vmem:[%s3351_s29 + $0x788] sm:$0xff]  ;;  %v582_v51 = vld [vmem:[#allocation3 + $0x320] sm:$0xff] }
  0xc1   : > { %2779 = vmatpush1.bf16.msra.mxu1 %v2778_v2  ;;  %2653 = vmatprep.subr.bf16.mxu0 %v2652_v3  ;;  %v855_v2 = vld [vmem:[%s3351_s29 + $0x7a8] sm:$0xff]  ;;  %v534_v3 = vld [vmem:[#allocation3 + $0x1a0] sm:$0xff]  ;;  %v2798_v8 = vpack.c.bf16 %v848_v0, %v844_v62  ;;  %v485_v0 = vld [vmem:[#allocation3 + $0x18] sm:$0xff] }
  0xc2   : > { %985 = vmatmul.mubr.f32.gmra.mrb[18].mxu0 %v518_v11  ;;  %2781 = vmatprep.subr.bf16.mxu1 %v2780_v7  ;;  %v2670_v7 = vpack.c.bf16 %v846_v61, %v842_v60  ;;  %v2672_v9 = vpack.c.bf16 %v855_v2, %v851_v1  ;;  %v579_v48 = vld [vmem:[#allocation3 + $0x308] sm:$0xff]  ;;  %v602_v61 = vld [vmem:[#allocation3 + $0x3c0] sm:$0xff]  ;;  %v484_v1 = vld [vmem:[#allocation3 + $0x10] sm:$0xff] }
  0xc3   : > { %1499 = vmatmul.mubr.f32.gmra.mrb[18].mxu1 %v518_v11  ;;  %990 = vmatprep.mubr.f32.mxu0 %v523_v14  ;;  %v854_v11 = vld [vmem:[%s3351_s29 + $0x7a0] sm:$0xff]  ;;  %v583_v50 = vld [vmem:[#allocation3 + $0x328] sm:$0xff]  ;;  %v489_v2 = vld [vmem:[#allocation3 + $0x38] sm:$0xff] }
  0xc4   : > { %1504 = vmatprep.mubr.f32.mxu1 %v523_v14  ;;  %2655 = vmatpush1.bf16.msra.mxu0 %v2654_v15  ;;  %v856_v14 = vld [vmem:[%s3351_s29 + $0x7b0] sm:$0xff]  ;;  %v859_v15 = vld [vmem:[%s3351_s29 + $0x7c8] sm:$0xff] }
  0xc5   : > { %2783 = vmatpush1.bf16.msra.mxu1 %v2782_v16  ;;  %2657 = vmatprep.subr.bf16.mxu0 %v2656_v17  ;;  %v863_v16 = vld [vmem:[%s3351_s29 + $0x7e8] sm:$0xff]  ;;  %v538_v17 = vld [vmem:[#allocation3 + $0x1c0] sm:$0xff]  ;;  %v2802_v22 = vpack.c.bf16 %v856_v14, %v852_v12  ;;  %v509_v12 = vld [vmem:[#allocation3 + $0xd8] sm:$0xff] }
  0xc6   : > { %991 = vmatmul.mubr.f32.gmra.mrb[20].mxu0 %v522_v25  ;;  %2785 = vmatprep.subr.bf16.mxu1 %v2784_v21  ;;  %v2674_v21 = vpack.c.bf16 %v854_v11, %v850_v10  ;;  %v2676_v23 = vpack.c.bf16 %v863_v16, %v859_v15  ;;  %v587_v52 = vld [vmem:[#allocation3 + $0x348] sm:$0xff]  ;;  %v505_v10 = vld [vmem:[#allocation3 + $0xb8] sm:$0xff]  ;;  %v504_v11 = vld [vmem:[#allocation3 + $0xb0] sm:$0xff] }
  0xc7   : > { %1505 = vmatmul.mubr.f32.gmra.mrb[20].mxu1 %v522_v25  ;;  %996 = vmatprep.mubr.f32.mxu0 %v527_v28  ;;  %v862_v25 = vld [vmem:[%s3351_s29 + $0x7e0] sm:$0xff]  ;;  %v603_v60 = vld [vmem:[#allocation3 + $0x3c8] sm:$0xff]  ;;  %v513_v14 = vld [vmem:[#allocation3 + $0xf8] sm:$0xff] }
  0xc8   : > { %1510 = vmatprep.mubr.f32.mxu1 %v527_v28  ;;  %2659 = vmatpush1.bf16.msra.mxu0 %v2658_v29  ;;  %v864_v28 = vld [vmem:[%s3351_s29 + $0x7f0] sm:$0xff]  ;;  %v542_v29 = vld [vmem:[#allocation3 + $0x1e0] sm:$0xff]  ;;  %v607_v62 = vld [vmem:[#allocation3 + $0x3e8] sm:$0xff] }
  0xc9   : > { %2787 = vmatpush1.bf16.msra.mxu1 %v2786_v30  ;;  %2661 = vmatprep.subr.bf16.mxu0 %v2660_v31  ;;  %v547_v30 = vld [vmem:[#allocation3 + $0x208] sm:$0xff]  ;;  %v2678_v31 = vpack.c.bf16 %v862_v25, %v858_v24  ;;  %v2806_v32 = vpack.c.bf16 %v864_v28, %v860_v27  ;;  %v512_v15 = vld [vmem:[#allocation3 + $0xf0] sm:$0xff]  ;;  %v517_v16 = vld [vmem:[#allocation3 + $0x118] sm:$0xff] }
  0xca   : > { %997 = vmatmul.mubr.f32.gmra.mrb[22].mxu0 %v526_v39  ;;  %2789 = vmatprep.subr.bf16.mxu1 %v2788_v35  ;;  %v550_v35 = vld [vmem:[#allocation3 + $0x220] sm:$0xff]  ;;  %v533_v24 = vld [vmem:[#allocation3 + $0x198] sm:$0xff]  ;;  %v532_v25 = vld [vmem:[#allocation3 + $0x190] sm:$0xff] }
  0xcb   : > { %1511 = vmatmul.mubr.f32.gmra.mrb[22].mxu1 %v526_v39  ;;  %1002 = vmatprep.mubr.f32.mxu0 %v531_v42  ;;  %v558_v39 = vld [vmem:[#allocation3 + $0x260] sm:$0xff]  ;;  %v536_v27 = vld [vmem:[#allocation3 + $0x1b0] sm:$0xff]  ;;  %v541_v28 = vld [vmem:[#allocation3 + $0x1d8] sm:$0xff] }
  0xcc   : > { %1516 = vmatprep.mubr.f32.mxu1 %v531_v42  ;;  %2663 = vmatpush1.bf16.msra.mxu0 %v2662_v43  ;;  %v567_v42 = vld [vmem:[#allocation3 + $0x2a8] sm:$0xff]  ;;  %v566_v43 = vld [vmem:[#allocation3 + $0x2a0] sm:$0xff] }
  0xcd   : > { %2791 = vmatpush1.bf16.msra.mxu1 %v2790_v44  ;;  %2665 = vmatprep.subr.bf16.mxu0 %v2664_v45  ;;  %v571_v44 = vld [vmem:[#allocation3 + $0x2c8] sm:$0xff]  ;;  %v570_v45 = vld [vmem:[#allocation3 + $0x2c0] sm:$0xff] }
  0xce   : > { %1003 = vmatmul.mubr.f32.gmra.mrb[24].mxu0 %v530_v53  ;;  %2793 = vmatprep.subr.bf16.mxu1 %v2792_v49  ;;  %v578_v49 = vld [vmem:[#allocation3 + $0x300] sm:$0xff] }
  0xcf   : > { %1517 = vmatmul.mubr.f32.gmra.mrb[24].mxu1 %v530_v53  ;;  %1008 = vmatprep.mubr.f32.mxu0 %v535_v56  ;;  %v586_v53 = vld [vmem:[#allocation3 + $0x340] sm:$0xff] }
  0xd0   : > { %1522 = vmatprep.mubr.f32.mxu1 %v535_v56  ;;  %2667 = vmatpush1.bf16.msra.mxu0 %v2666_v57  ;;  %v595_v56 = vld [vmem:[#allocation3 + $0x388] sm:$0xff]  ;;  %v594_v57 = vld [vmem:[#allocation3 + $0x380] sm:$0xff] }
  0xd1   : > { %2795 = vmatpush1.bf16.msra.mxu1 %v2794_v58  ;;  %2669 = vmatprep.subr.bf16.mxu0 %v2668_v59  ;;  %v599_v58 = vld [vmem:[#allocation3 + $0x3a8] sm:$0xff]  ;;  %v598_v59 = vld [vmem:[#allocation3 + $0x3a0] sm:$0xff] }
  0xd2   : > { %1009 = vmatmul.mubr.f32.gmra.mrb[26].mxu0 %v534_v3  ;;  %2797 = vmatprep.subr.bf16.mxu1 %v2796_v63  ;;  %v606_v63 = vld [vmem:[#allocation3 + $0x3e0] sm:$0xff] }
  0xd3   : > { %1523 = vmatmul.mubr.f32.gmra.mrb[26].mxu1 %v534_v3  ;;  %1014 = vmatprep.mubr.f32.mxu0 %v539_v6  ;;  %v488_v3 = vld [vmem:[#allocation3 + $0x30] sm:$0xff] }
  0xd4   : > { %1528 = vmatprep.mubr.f32.mxu1 %v539_v6  ;;  %2671 = vmatpush1.bf16.msra.mxu0 %v2670_v7  ;;  %v497_v6 = vld [vmem:[#allocation3 + $0x78] sm:$0xff]  ;;  %v496_v7 = vld [vmem:[#allocation3 + $0x70] sm:$0xff] }
  0xd5   : > { %2799 = vmatpush1.bf16.msra.mxu1 %v2798_v8  ;;  %2673 = vmatprep.subr.bf16.mxu0 %v2672_v9  ;;  %v501_v8 = vld [vmem:[#allocation3 + $0x98] sm:$0xff]  ;;  %v500_v9 = vld [vmem:[#allocation3 + $0x90] sm:$0xff] }
  0xd6   : > { %1015 = vmatmul.mubr.f32.gmra.mrb[28].mxu0 %v538_v17  ;;  %2801 = vmatprep.subr.bf16.mxu1 %v2800_v13  ;;  %v508_v13 = vld [vmem:[#allocation3 + $0xd0] sm:$0xff] }
  0xd7   : > { %1529 = vmatmul.mubr.f32.gmra.mrb[28].mxu1 %v538_v17  ;;  %1020 = vmatprep.mubr.f32.mxu0 %v543_v20  ;;  %v516_v17 = vld [vmem:[#allocation3 + $0x110] sm:$0xff] }
  0xd8   : > { %1534 = vmatprep.mubr.f32.mxu1 %v543_v20  ;;  %2675 = vmatpush1.bf16.msra.mxu0 %v2674_v21  ;;  %v525_v20 = vld [vmem:[#allocation3 + $0x158] sm:$0xff]  ;;  %v524_v21 = vld [vmem:[#allocation3 + $0x150] sm:$0xff] }
  0xd9   : > { %2803 = vmatpush1.bf16.msra.mxu1 %v2802_v22  ;;  %2677 = vmatprep.subr.bf16.mxu0 %v2676_v23  ;;  %v529_v22 = vld [vmem:[#allocation3 + $0x178] sm:$0xff]  ;;  %v528_v23 = vld [vmem:[#allocation3 + $0x170] sm:$0xff] }
  0xda   : > { %1021 = vmatmul.mubr.f32.gmra.mrb[30].mxu0 %v542_v29  ;;  %2805 = vmatprep.subr.bf16.mxu1 %v2804_v26  ;;  %v537_v26 = vld [vmem:[#allocation3 + $0x1b8] sm:$0xff] }
  0xdb   : > { %1535 = vmatmul.mubr.f32.gmra.mrb[30].mxu1 %v542_v29  ;;  %1026 = vmatprep.mubr.f32.mxu0 %v547_v30  ;;  %v540_v29 = vld [vmem:[#allocation3 + $0x1d0] sm:$0xff] }
  0xdc   : > { %1540 = vmatprep.mubr.f32.mxu1 %v547_v30  ;;  %2679 = vmatpush1.bf16.msra.mxu0 %v2678_v31  ;;  %v545_v30 = vld [vmem:[#allocation3 + $0x1f8] sm:$0xff]  ;;  %v544_v31 = vld [vmem:[#allocation3 + $0x1f0] sm:$0xff] }
  0xdd   : > { %2807 = vmatpush1.bf16.msra.mxu1 %v2806_v32  ;;  %v549_v32 = vld [vmem:[#allocation3 + $0x218] sm:$0xff] }
  0xde   : > { %1027 = vmatmul.mubr.f32.gmra.mrb[32].mxu0 %v546_v33 }
  0xdf   : > { %1541 = vmatmul.mubr.f32.gmra.mrb[32].mxu1 %v546_v33  ;;  %1032 = vmatprep.mubr.f32.mxu0 %v551_v34  ;;  %v548_v33 = vld [vmem:[#allocation3 + $0x210] sm:$0xff] }
  0xe0   : > { %1546 = vmatprep.mubr.f32.mxu1 %v551_v34  ;;  %v553_v34 = vld [vmem:[#allocation3 + $0x238] sm:$0xff] }
  0xe2   : > { %1033 = vmatmul.mubr.f32.gmra.mrb[34].mxu0 %v550_v35 }
  0xe3   : > { %1547 = vmatmul.mubr.f32.gmra.mrb[34].mxu1 %v550_v35  ;;  %1038 = vmatprep.mubr.f32.mxu0 %v555_v36  ;;  %v552_v35 = vld [vmem:[#allocation3 + $0x230] sm:$0xff] }
  0xe4   : > { %1552 = vmatprep.mubr.f32.mxu1 %v555_v36  ;;  %v557_v36 = vld [vmem:[#allocation3 + $0x258] sm:$0xff] }
  0xe6   : > { %1039 = vmatmul.mubr.f32.gmra.mrb[36].mxu0 %v554_v37 }
  0xe7   : > { %1553 = vmatmul.mubr.f32.gmra.mrb[36].mxu1 %v554_v37  ;;  %1044 = vmatprep.mubr.f32.mxu0 %v559_v38  ;;  %v556_v37 = vld [vmem:[#allocation3 + $0x250] sm:$0xff] }
  0xe8   : > { %1558 = vmatprep.mubr.f32.mxu1 %v559_v38  ;;  %v561_v38 = vld [vmem:[#allocation3 + $0x278] sm:$0xff] }
  0xea   : > { %1045 = vmatmul.mubr.f32.gmra.mrb[38].mxu0 %v558_v39 }
  0xeb   : > { %1559 = vmatmul.mubr.f32.gmra.mrb[38].mxu1 %v558_v39  ;;  %1050 = vmatprep.mubr.f32.mxu0 %v563_v40  ;;  %v560_v39 = vld [vmem:[#allocation3 + $0x270] sm:$0xff] }
  0xec   : > { %1564 = vmatprep.mubr.f32.mxu1 %v563_v40  ;;  %v565_v40 = vld [vmem:[#allocation3 + $0x298] sm:$0xff] }
  0xee   : > { %1051 = vmatmul.mubr.f32.gmra.mrb[40].mxu0 %v562_v41 }
  0xef   : > { %1565 = vmatmul.mubr.f32.gmra.mrb[40].mxu1 %v562_v41  ;;  %1056 = vmatprep.mubr.f32.mxu0 %v567_v42  ;;  %v564_v41 = vld [vmem:[#allocation3 + $0x290] sm:$0xff] }
  0xf0   : > { %1570 = vmatprep.mubr.f32.mxu1 %v567_v42  ;;  %v569_v42 = vld [vmem:[#allocation3 + $0x2b8] sm:$0xff] }
  0xf2   : > { %1057 = vmatmul.mubr.f32.gmra.mrb[42].mxu0 %v566_v43 }
  0xf3   : > { %1571 = vmatmul.mubr.f32.gmra.mrb[42].mxu1 %v566_v43  ;;  %1062 = vmatprep.mubr.f32.mxu0 %v571_v44  ;;  %v568_v43 = vld [vmem:[#allocation3 + $0x2b0] sm:$0xff] }
  0xf4   : > { %1576 = vmatprep.mubr.f32.mxu1 %v571_v44  ;;  %v573_v44 = vld [vmem:[#allocation3 + $0x2d8] sm:$0xff] }
  0xf6   : > { %1063 = vmatmul.mubr.f32.gmra.mrb[44].mxu0 %v570_v45 }
  0xf7   : > { %1577 = vmatmul.mubr.f32.gmra.mrb[44].mxu1 %v570_v45  ;;  %1068 = vmatprep.mubr.f32.mxu0 %v575_v46  ;;  %v572_v45 = vld [vmem:[#allocation3 + $0x2d0] sm:$0xff] }
  0xf8   : > { %1582 = vmatprep.mubr.f32.mxu1 %v575_v46  ;;  %v577_v46 = vld [vmem:[#allocation3 + $0x2f8] sm:$0xff] }
  0xfa   : > { %1069 = vmatmul.mubr.f32.gmra.mrb[46].mxu0 %v574_v47 }
  0xfb   : > { %1583 = vmatmul.mubr.f32.gmra.mrb[46].mxu1 %v574_v47  ;;  %1074 = vmatprep.mubr.f32.mxu0 %v579_v48  ;;  %v576_v47 = vld [vmem:[#allocation3 + $0x2f0] sm:$0xff] }
  0xfc   : > { %1588 = vmatprep.mubr.f32.mxu1 %v579_v48  ;;  %v581_v48 = vld [vmem:[#allocation3 + $0x318] sm:$0xff] }
  0xfe   : > { %1075 = vmatmul.mubr.f32.gmra.mrb[48].mxu0 %v578_v49 }
  0xff   : > { %1589 = vmatmul.mubr.f32.gmra.mrb[48].mxu1 %v578_v49  ;;  %1080 = vmatprep.mubr.f32.mxu0 %v583_v50  ;;  %v580_v49 = vld [vmem:[#allocation3 + $0x310] sm:$0xff] }
 0x100   : > { %1594 = vmatprep.mubr.f32.mxu1 %v583_v50  ;;  %v585_v50 = vld [vmem:[#allocation3 + $0x338] sm:$0xff] }
 0x102   : > { %1081 = vmatmul.mubr.f32.gmra.mrb[50].mxu0 %v582_v51 }
 0x103   : > { %1595 = vmatmul.mubr.f32.gmra.mrb[50].mxu1 %v582_v51  ;;  %1086 = vmatprep.mubr.f32.mxu0 %v587_v52  ;;  %v584_v51 = vld [vmem:[#allocation3 + $0x330] sm:$0xff] }
 0x104   : > { %1600 = vmatprep.mubr.f32.mxu1 %v587_v52  ;;  %v589_v52 = vld [vmem:[#allocation3 + $0x358] sm:$0xff] }
 0x106   : > { %1087 = vmatmul.mubr.f32.gmra.mrb[52].mxu0 %v586_v53 }
 0x107   : > { %1601 = vmatmul.mubr.f32.gmra.mrb[52].mxu1 %v586_v53  ;;  %1092 = vmatprep.mubr.f32.mxu0 %v591_v54  ;;  %v588_v53 = vld [vmem:[#allocation3 + $0x350] sm:$0xff] }
 0x108   : > { %1606 = vmatprep.mubr.f32.mxu1 %v591_v54  ;;  %v593_v54 = vld [vmem:[#allocation3 + $0x378] sm:$0xff] }
 0x10a   : > { %1093 = vmatmul.mubr.f32.gmra.mrb[54].mxu0 %v590_v55 }
 0x10b   : > { %1607 = vmatmul.mubr.f32.gmra.mrb[54].mxu1 %v590_v55  ;;  %1098 = vmatprep.mubr.f32.mxu0 %v595_v56  ;;  %v592_v55 = vld [vmem:[#allocation3 + $0x370] sm:$0xff] }
 0x10c   : > { %1612 = vmatprep.mubr.f32.mxu1 %v595_v56  ;;  %v597_v56 = vld [vmem:[#allocation3 + $0x398] sm:$0xff] }
 0x10e   : > { %1099 = vmatmul.mubr.f32.gmra.mrb[56].mxu0 %v594_v57 }
 0x10f   : > { %1613 = vmatmul.mubr.f32.gmra.mrb[56].mxu1 %v594_v57  ;;  %1104 = vmatprep.mubr.f32.mxu0 %v599_v58  ;;  %v596_v57 = vld [vmem:[#allocation3 + $0x390] sm:$0xff] }
 0x110   : > { %1618 = vmatprep.mubr.f32.mxu1 %v599_v58  ;;  %v601_v58 = vld [vmem:[#allocation3 + $0x3b8] sm:$0xff] }
 0x112   : > { %1105 = vmatmul.mubr.f32.gmra.mrb[58].mxu0 %v598_v59 }
 0x113   : > { %1619 = vmatmul.mubr.f32.gmra.mrb[58].mxu1 %v598_v59  ;;  %1110 = vmatprep.mubr.f32.mxu0 %v603_v60  ;;  %v600_v59 = vld [vmem:[#allocation3 + $0x3b0] sm:$0xff] }
 0x114   : > { %1624 = vmatprep.mubr.f32.mxu1 %v603_v60  ;;  %v605_v60 = vld [vmem:[#allocation3 + $0x3d8] sm:$0xff] }
 0x116   : > { %1111 = vmatmul.mubr.f32.gmra.mrb[60].mxu0 %v602_v61 }
 0x117   : > { %1625 = vmatmul.mubr.f32.gmra.mrb[60].mxu1 %v602_v61  ;;  %1116 = vmatprep.mubr.f32.mxu0 %v607_v62  ;;  %v604_v61 = vld [vmem:[#allocation3 + $0x3d0] sm:$0xff] }
 0x118   : > { %1630 = vmatprep.mubr.f32.mxu1 %v607_v62  ;;  %v609_v62 = vld [vmem:[#allocation3 + $0x3f8] sm:$0xff] }
 0x11a   : > { %1117 = vmatmul.mubr.f32.gmra.mrb[62].mxu0 %v606_v63 }
 0x11b   : > { %1631 = vmatmul.mubr.f32.gmra.mrb[62].mxu1 %v606_v63  ;;  %1187 = vmatprep.mubr.f32.mxu0 %v485_v0  ;;  %v608_v63 = vld [vmem:[#allocation3 + $0x3f0] sm:$0xff] }
 0x11c   : > { %1701 = vmatprep.mubr.f32.mxu1 %v485_v0 }
 0x11e   : > { %1188 = vmatmul.mubr.f32.vlgmr.msra.gmra.mrb[0].mxu0 %v484_v1 }
 0x11f   : > { %1702 = vmatmul.mubr.f32.vlgmr.msra.gmra.mrb[0].mxu1 %v484_v1  ;;  %1193 = vmatprep.mubr.f32.mxu0 %v489_v2 }
 0x120   : > { %1707 = vmatprep.mubr.f32.mxu1 %v489_v2 }
 0x122   : > { %1194 = vmatmul.mubr.f32.gmra.mrb[2].mxu0 %v488_v3 }
 0x123   : > { %1708 = vmatmul.mubr.f32.gmra.mrb[2].mxu1 %v488_v3  ;;  %1199 = vmatprep.mubr.f32.mxu0 %v493_v4 }
 0x124   : > { %1713 = vmatprep.mubr.f32.mxu1 %v493_v4 }
 0x126   : > { %1200 = vmatmul.mubr.f32.gmra.mrb[4].mxu0 %v492_v5 }
 0x127   : > { %1714 = vmatmul.mubr.f32.gmra.mrb[4].mxu1 %v492_v5  ;;  %1205 = vmatprep.mubr.f32.mxu0 %v497_v6 }
 0x128   : > { %1719 = vmatprep.mubr.f32.mxu1 %v497_v6 }
 0x12a   : > { %1206 = vmatmul.mubr.f32.gmra.mrb[6].mxu0 %v496_v7 }
 0x12b   : > { %1720 = vmatmul.mubr.f32.gmra.mrb[6].mxu1 %v496_v7  ;;  %1211 = vmatprep.mubr.f32.mxu0 %v501_v8 }
 0x12c   : > { %1725 = vmatprep.mubr.f32.mxu1 %v501_v8 }
 0x12e   : > { %1212 = vmatmul.mubr.f32.gmra.mrb[8].mxu0 %v500_v9 }
 0x12f   : > { %1726 = vmatmul.mubr.f32.gmra.mrb[8].mxu1 %v500_v9  ;;  %1217 = vmatprep.mubr.f32.mxu0 %v505_v10 }
 0x130   : > { %1731 = vmatprep.mubr.f32.mxu1 %v505_v10 }
 0x132   : > { %1218 = vmatmul.mubr.f32.gmra.mrb[10].mxu0 %v504_v11 }
 0x133   : > { %1732 = vmatmul.mubr.f32.gmra.mrb[10].mxu1 %v504_v11  ;;  %1223 = vmatprep.mubr.f32.mxu0 %v509_v12 }
 0x134   : > { %1737 = vmatprep.mubr.f32.mxu1 %v509_v12 }
 0x136   : > { %1224 = vmatmul.mubr.f32.gmra.mrb[12].mxu0 %v508_v13 }
 0x137   : > { %1738 = vmatmul.mubr.f32.gmra.mrb[12].mxu1 %v508_v13  ;;  %1229 = vmatprep.mubr.f32.mxu0 %v513_v14 }
 0x138   : > { %1743 = vmatprep.mubr.f32.mxu1 %v513_v14 }
 0x13a   : > { %1230 = vmatmul.mubr.f32.gmra.mrb[14].mxu0 %v512_v15 }
 0x13b   : > { %1744 = vmatmul.mubr.f32.gmra.mrb[14].mxu1 %v512_v15  ;;  %1235 = vmatprep.mubr.f32.mxu0 %v517_v16 }
 0x13c   : > { %1749 = vmatprep.mubr.f32.mxu1 %v517_v16 }
 0x13e   : > { %1236 = vmatmul.mubr.f32.gmra.mrb[16].mxu0 %v516_v17 }
 0x13f   : > { %1750 = vmatmul.mubr.f32.gmra.mrb[16].mxu1 %v516_v17  ;;  %1241 = vmatprep.mubr.f32.mxu0 %v521_v18 }
 0x140   : > { %1755 = vmatprep.mubr.f32.mxu1 %v521_v18 }
 0x142   : > { %1242 = vmatmul.mubr.f32.gmra.mrb[18].mxu0 %v520_v19 }
 0x143   : > { %1756 = vmatmul.mubr.f32.gmra.mrb[18].mxu1 %v520_v19  ;;  %1247 = vmatprep.mubr.f32.mxu0 %v525_v20 }
 0x144   : > { %1761 = vmatprep.mubr.f32.mxu1 %v525_v20 }
 0x146   : > { %1248 = vmatmul.mubr.f32.gmra.mrb[20].mxu0 %v524_v21 }
 0x147   : > { %1762 = vmatmul.mubr.f32.gmra.mrb[20].mxu1 %v524_v21  ;;  %1253 = vmatprep.mubr.f32.mxu0 %v529_v22 }
 0x148   : > { %1767 = vmatprep.mubr.f32.mxu1 %v529_v22 }
 0x14a   : > { %1254 = vmatmul.mubr.f32.gmra.mrb[22].mxu0 %v528_v23 }
 0x14b   : > { %1768 = vmatmul.mubr.f32.gmra.mrb[22].mxu1 %v528_v23  ;;  %1259 = vmatprep.mubr.f32.mxu0 %v533_v24 }
 0x14c   : > { %1773 = vmatprep.mubr.f32.mxu1 %v533_v24 }
 0x14e   : > { %1260 = vmatmul.mubr.f32.gmra.mrb[24].mxu0 %v532_v25 }
 0x14f   : > { %1774 = vmatmul.mubr.f32.gmra.mrb[24].mxu1 %v532_v25  ;;  %1265 = vmatprep.mubr.f32.mxu0 %v537_v26 }
 0x150   : > { %1779 = vmatprep.mubr.f32.mxu1 %v537_v26 }
 0x152   : > { %1266 = vmatmul.mubr.f32.gmra.mrb[26].mxu0 %v536_v27 }
 0x153   : > { %1780 = vmatmul.mubr.f32.gmra.mrb[26].mxu1 %v536_v27  ;;  %1271 = vmatprep.mubr.f32.mxu0 %v541_v28 }
 0x154   : > { %1785 = vmatprep.mubr.f32.mxu1 %v541_v28 }
 0x156   : > { %1272 = vmatmul.mubr.f32.gmra.mrb[28].mxu0 %v540_v29 }
 0x157   : > { %1786 = vmatmul.mubr.f32.gmra.mrb[28].mxu1 %v540_v29  ;;  %1277 = vmatprep.mubr.f32.mxu0 %v545_v30 }
 0x158   : > { %1791 = vmatprep.mubr.f32.mxu1 %v545_v30 }
 0x15a   : > { %1278 = vmatmul.mubr.f32.gmra.mrb[30].mxu0 %v544_v31 }
 0x15b   : > { %1792 = vmatmul.mubr.f32.gmra.mrb[30].mxu1 %v544_v31  ;;  %1283 = vmatprep.mubr.f32.mxu0 %v549_v32 }
 0x15c   : > { %1797 = vmatprep.mubr.f32.mxu1 %v549_v32 }
 0x15e   : > { %1284 = vmatmul.mubr.f32.gmra.mrb[32].mxu0 %v548_v33 }
 0x15f   : > { %1798 = vmatmul.mubr.f32.gmra.mrb[32].mxu1 %v548_v33  ;;  %1289 = vmatprep.mubr.f32.mxu0 %v553_v34 }
 0x160   : > { %1803 = vmatprep.mubr.f32.mxu1 %v553_v34 }
 0x162   : > { %1290 = vmatmul.mubr.f32.gmra.mrb[34].mxu0 %v552_v35 }
 0x163   : > { %1804 = vmatmul.mubr.f32.gmra.mrb[34].mxu1 %v552_v35  ;;  %1295 = vmatprep.mubr.f32.mxu0 %v557_v36 }
 0x164   : > { %1809 = vmatprep.mubr.f32.mxu1 %v557_v36 }
 0x166   : > { %1296 = vmatmul.mubr.f32.gmra.mrb[36].mxu0 %v556_v37 }
 0x167   : > { %1810 = vmatmul.mubr.f32.gmra.mrb[36].mxu1 %v556_v37  ;;  %1301 = vmatprep.mubr.f32.mxu0 %v561_v38 }
 0x168   : > { %1815 = vmatprep.mubr.f32.mxu1 %v561_v38 }
 0x16a   : > { %1302 = vmatmul.mubr.f32.gmra.mrb[38].mxu0 %v560_v39 }
 0x16b   : > { %1816 = vmatmul.mubr.f32.gmra.mrb[38].mxu1 %v560_v39  ;;  %1307 = vmatprep.mubr.f32.mxu0 %v565_v40 }
 0x16c   : > { %1821 = vmatprep.mubr.f32.mxu1 %v565_v40 }
 0x16e   : > { %1308 = vmatmul.mubr.f32.gmra.mrb[40].mxu0 %v564_v41 }
 0x16f   : > { %1822 = vmatmul.mubr.f32.gmra.mrb[40].mxu1 %v564_v41  ;;  %1313 = vmatprep.mubr.f32.mxu0 %v569_v42 }
 0x170   : > { %1827 = vmatprep.mubr.f32.mxu1 %v569_v42 }
 0x172   : > { %1314 = vmatmul.mubr.f32.gmra.mrb[42].mxu0 %v568_v43 }
 0x173   : > { %1828 = vmatmul.mubr.f32.gmra.mrb[42].mxu1 %v568_v43  ;;  %1319 = vmatprep.mubr.f32.mxu0 %v573_v44 }
 0x174   : > { %1833 = vmatprep.mubr.f32.mxu1 %v573_v44 }
 0x176   : > { %1320 = vmatmul.mubr.f32.gmra.mrb[44].mxu0 %v572_v45 }
 0x177   : > { %1834 = vmatmul.mubr.f32.gmra.mrb[44].mxu1 %v572_v45  ;;  %1325 = vmatprep.mubr.f32.mxu0 %v577_v46 }
 0x178   : > { %1839 = vmatprep.mubr.f32.mxu1 %v577_v46 }
 0x17a   : > { %1326 = vmatmul.mubr.f32.gmra.mrb[46].mxu0 %v576_v47 }
 0x17b   : > { %1840 = vmatmul.mubr.f32.gmra.mrb[46].mxu1 %v576_v47  ;;  %1331 = vmatprep.mubr.f32.mxu0 %v581_v48 }
 0x17c   : > { %1845 = vmatprep.mubr.f32.mxu1 %v581_v48 }
 0x17e   : > { %1332 = vmatmul.mubr.f32.gmra.mrb[48].mxu0 %v580_v49 }
 0x17f   : > { %1846 = vmatmul.mubr.f32.gmra.mrb[48].mxu1 %v580_v49  ;;  %1337 = vmatprep.mubr.f32.mxu0 %v585_v50 }
 0x180   : > { %1851 = vmatprep.mubr.f32.mxu1 %v585_v50 }
 0x182   : > { %1338 = vmatmul.mubr.f32.gmra.mrb[50].mxu0 %v584_v51 }
 0x183   : > { %1852 = vmatmul.mubr.f32.gmra.mrb[50].mxu1 %v584_v51  ;;  %1343 = vmatprep.mubr.f32.mxu0 %v589_v52 }
 0x184   : > { %1857 = vmatprep.mubr.f32.mxu1 %v589_v52 }
 0x186   : > { %1344 = vmatmul.mubr.f32.gmra.mrb[52].mxu0 %v588_v53 }
 0x187   : > { %1858 = vmatmul.mubr.f32.gmra.mrb[52].mxu1 %v588_v53  ;;  %1349 = vmatprep.mubr.f32.mxu0 %v593_v54 }
 0x188   : > { %1863 = vmatprep.mubr.f32.mxu1 %v593_v54 }
 0x18a   : > { %1350 = vmatmul.mubr.f32.gmra.mrb[54].mxu0 %v592_v55 }
 0x18b   : > { %1864 = vmatmul.mubr.f32.gmra.mrb[54].mxu1 %v592_v55  ;;  %1355 = vmatprep.mubr.f32.mxu0 %v597_v56 }
 0x18c   : > { %1869 = vmatprep.mubr.f32.mxu1 %v597_v56 }
 0x18e   : > { %1356 = vmatmul.mubr.f32.gmra.mrb[56].mxu0 %v596_v57 }
 0x18f   : > { %1870 = vmatmul.mubr.f32.gmra.mrb[56].mxu1 %v596_v57  ;;  %1361 = vmatprep.mubr.f32.mxu0 %v601_v58 }
 0x190   : > { %1875 = vmatprep.mubr.f32.mxu1 %v601_v58 }
 0x192   : > { %1362 = vmatmul.mubr.f32.gmra.mrb[58].mxu0 %v600_v59 }
 0x193   : > { %1876 = vmatmul.mubr.f32.gmra.mrb[58].mxu1 %v600_v59  ;;  %1367 = vmatprep.mubr.f32.mxu0 %v605_v60 }
 0x194   : > { %1881 = vmatprep.mubr.f32.mxu1 %v605_v60 }
 0x196   : > { %1368 = vmatmul.mubr.f32.gmra.mrb[60].mxu0 %v604_v61 }
 0x197   : > { %1882 = vmatmul.mubr.f32.gmra.mrb[60].mxu1 %v604_v61  ;;  %1373 = vmatprep.mubr.f32.mxu0 %v609_v62 }
 0x198   : > { %1887 = vmatprep.mubr.f32.mxu1 %v609_v62 }
 0x19a   : > { %1374 = vmatmul.mubr.f32.gmra.mrb[62].mxu0 %v608_v63 }
 0x19b   : > { %1888 = vmatmul.mubr.f32.gmra.mrb[62].mxu1 %v608_v63 }
 0x1f1   : > { %v1189_v0 = vpop.f32.mrb[0].mxu0 }
 0x1f2   : > { %2281 = vst [vmem:[%s3614_s19] sm:$0xff] %v1189_v0  ;;  %v1703_v1 = vpop.f32.mrb[0].mxu1  ;;  %v1191_v2 = vpop.f32.mrb[1].mxu0 }
 0x1f3   : > { %2283 = vst [vmem:[%s3614_s19 + $0x10] sm:$0xff] %v1703_v1  ;;  %2282 = vst [vmem:[%s3614_s19 + $0x8] sm:$0xff] %v1191_v2  ;;  %v1705_v3 = vpop.f32.mrb[1].mxu1 }
 0x1f4   : > { %2284 = vst [vmem:[%s3614_s19 + $0x18] sm:$0xff] %v1705_v3 }
 0x1f5   : > { %v1195_v4 = vpop.f32.mrb[2].mxu0 }
 0x1f6   : > { %2285 = vst [vmem:[%s3614_s19 + $0x20] sm:$0xff] %v1195_v4  ;;  %v1709_v5 = vpop.f32.mrb[2].mxu1  ;;  %v1197_v6 = vpop.f32.mrb[3].mxu0 }
 0x1f7   : > { %2287 = vst [vmem:[%s3614_s19 + $0x30] sm:$0xff] %v1709_v5  ;;  %2286 = vst [vmem:[%s3614_s19 + $0x28] sm:$0xff] %v1197_v6  ;;  %v1711_v7 = vpop.f32.mrb[3].mxu1 }
 0x1f8   : > { %2288 = vst [vmem:[%s3614_s19 + $0x38] sm:$0xff] %v1711_v7 }
 0x1f9   : > { %v1201_v8 = vpop.f32.mrb[4].mxu0 }
 0x1fa   : > { %2289 = vst [vmem:[%s3614_s19 + $0x40] sm:$0xff] %v1201_v8  ;;  %v1715_v9 = vpop.f32.mrb[4].mxu1  ;;  %v1203_v10 = vpop.f32.mrb[5].mxu0 }
 0x1fb   : > { %2291 = vst [vmem:[%s3614_s19 + $0x50] sm:$0xff] %v1715_v9  ;;  %2290 = vst [vmem:[%s3614_s19 + $0x48] sm:$0xff] %v1203_v10  ;;  %v1717_v11 = vpop.f32.mrb[5].mxu1 }
 0x1fc   : > { %2292 = vst [vmem:[%s3614_s19 + $0x58] sm:$0xff] %v1717_v11 }
 0x1fd   : > { %v1207_v12 = vpop.f32.mrb[6].mxu0 }
 0x1fe   : > { %2293 = vst [vmem:[%s3614_s19 + $0x60] sm:$0xff] %v1207_v12  ;;  %v1721_v13 = vpop.f32.mrb[6].mxu1  ;;  %v1209_v14 = vpop.f32.mrb[7].mxu0 }
 0x1ff   : > { %2295 = vst [vmem:[%s3614_s19 + $0x70] sm:$0xff] %v1721_v13  ;;  %2294 = vst [vmem:[%s3614_s19 + $0x68] sm:$0xff] %v1209_v14  ;;  %v1723_v15 = vpop.f32.mrb[7].mxu1 }
 0x200   : > { %2296 = vst [vmem:[%s3614_s19 + $0x78] sm:$0xff] %v1723_v15 }
 0x201   : > { %v1213_v16 = vpop.f32.mrb[8].mxu0 }
 0x202   : > { %2297 = vst [vmem:[%s3614_s19 + $0x80] sm:$0xff] %v1213_v16  ;;  %v1727_v17 = vpop.f32.mrb[8].mxu1  ;;  %v1215_v18 = vpop.f32.mrb[9].mxu0 }
 0x203   : > { %2299 = vst [vmem:[%s3614_s19 + $0x90] sm:$0xff] %v1727_v17  ;;  %2298 = vst [vmem:[%s3614_s19 + $0x88] sm:$0xff] %v1215_v18  ;;  %v1729_v19 = vpop.f32.mrb[9].mxu1 }
 0x204   : > { %2300 = vst [vmem:[%s3614_s19 + $0x98] sm:$0xff] %v1729_v19 }
 0x205   : > { %v1219_v20 = vpop.f32.mrb[10].mxu0 }
 0x206   : > { %2301 = vst [vmem:[%s3614_s19 + $0xa0] sm:$0xff] %v1219_v20  ;;  %v1733_v21 = vpop.f32.mrb[10].mxu1  ;;  %v1221_v22 = vpop.f32.mrb[11].mxu0 }
 0x207   : > { %2303 = vst [vmem:[%s3614_s19 + $0xb0] sm:$0xff] %v1733_v21  ;;  %2302 = vst [vmem:[%s3614_s19 + $0xa8] sm:$0xff] %v1221_v22  ;;  %v1735_v23 = vpop.f32.mrb[11].mxu1 }
 0x208   : > { %2304 = vst [vmem:[%s3614_s19 + $0xb8] sm:$0xff] %v1735_v23 }
 0x209   : > { %v1225_v24 = vpop.f32.mrb[12].mxu0 }
 0x20a   : > { %2305 = vst [vmem:[%s3614_s19 + $0xc0] sm:$0xff] %v1225_v24  ;;  %v1739_v25 = vpop.f32.mrb[12].mxu1  ;;  %v1227_v26 = vpop.f32.mrb[13].mxu0 }
 0x20b   : > { %2307 = vst [vmem:[%s3614_s19 + $0xd0] sm:$0xff] %v1739_v25  ;;  %2306 = vst [vmem:[%s3614_s19 + $0xc8] sm:$0xff] %v1227_v26  ;;  %v1741_v27 = vpop.f32.mrb[13].mxu1 }
 0x20c   : > { %2308 = vst [vmem:[%s3614_s19 + $0xd8] sm:$0xff] %v1741_v27 }
 0x20d   : > { %v1231_v28 = vpop.f32.mrb[14].mxu0 }
 0x20e   : > { %2309 = vst [vmem:[%s3614_s19 + $0xe0] sm:$0xff] %v1231_v28  ;;  %v1745_v29 = vpop.f32.mrb[14].mxu1  ;;  %v1233_v30 = vpop.f32.mrb[15].mxu0 }
 0x20f   : > { %2311 = vst [vmem:[%s3614_s19 + $0xf0] sm:$0xff] %v1745_v29  ;;  %2310 = vst [vmem:[%s3614_s19 + $0xe8] sm:$0xff] %v1233_v30  ;;  %v1747_v31 = vpop.f32.mrb[15].mxu1 }
 0x210   : > { %2312 = vst [vmem:[%s3614_s19 + $0xf8] sm:$0xff] %v1747_v31 }
 0x211   : > { %v1237_v32 = vpop.f32.mrb[16].mxu0 }
 0x212   : > { %2313 = vst [vmem:[%s3614_s19 + $0x100] sm:$0xff] %v1237_v32  ;;  %v1751_v33 = vpop.f32.mrb[16].mxu1  ;;  %v1239_v34 = vpop.f32.mrb[17].mxu0 }
 0x213   : > { %2315 = vst [vmem:[%s3614_s19 + $0x110] sm:$0xff] %v1751_v33  ;;  %2314 = vst [vmem:[%s3614_s19 + $0x108] sm:$0xff] %v1239_v34  ;;  %v1753_v35 = vpop.f32.mrb[17].mxu1 }
 0x214   : > { %2316 = vst [vmem:[%s3614_s19 + $0x118] sm:$0xff] %v1753_v35 }
 0x215   : > { %v1243_v36 = vpop.f32.mrb[18].mxu0 }
 0x216   : > { %2317 = vst [vmem:[%s3614_s19 + $0x120] sm:$0xff] %v1243_v36  ;;  %v1757_v37 = vpop.f32.mrb[18].mxu1  ;;  %v1245_v38 = vpop.f32.mrb[19].mxu0 }
 0x217   : > { %2319 = vst [vmem:[%s3614_s19 + $0x130] sm:$0xff] %v1757_v37  ;;  %2318 = vst [vmem:[%s3614_s19 + $0x128] sm:$0xff] %v1245_v38  ;;  %v1759_v39 = vpop.f32.mrb[19].mxu1 }
 0x218   : > { %2320 = vst [vmem:[%s3614_s19 + $0x138] sm:$0xff] %v1759_v39 }
 0x219   : > { %v1249_v40 = vpop.f32.mrb[20].mxu0 }
 0x21a   : > { %2321 = vst [vmem:[%s3614_s19 + $0x140] sm:$0xff] %v1249_v40  ;;  %v1763_v41 = vpop.f32.mrb[20].mxu1  ;;  %v1251_v42 = vpop.f32.mrb[21].mxu0 }
 0x21b   : > { %2323 = vst [vmem:[%s3614_s19 + $0x150] sm:$0xff] %v1763_v41  ;;  %2322 = vst [vmem:[%s3614_s19 + $0x148] sm:$0xff] %v1251_v42  ;;  %v1765_v43 = vpop.f32.mrb[21].mxu1 }
 0x21c   : > { %2324 = vst [vmem:[%s3614_s19 + $0x158] sm:$0xff] %v1765_v43 }
 0x21d   : > { %v1255_v44 = vpop.f32.mrb[22].mxu0 }
 0x21e   : > { %2325 = vst [vmem:[%s3614_s19 + $0x160] sm:$0xff] %v1255_v44  ;;  %v1769_v45 = vpop.f32.mrb[22].mxu1  ;;  %v1257_v46 = vpop.f32.mrb[23].mxu0 }
 0x21f   : > { %2327 = vst [vmem:[%s3614_s19 + $0x170] sm:$0xff] %v1769_v45  ;;  %2326 = vst [vmem:[%s3614_s19 + $0x168] sm:$0xff] %v1257_v46  ;;  %v1771_v47 = vpop.f32.mrb[23].mxu1 }
 0x220   : > { %2328 = vst [vmem:[%s3614_s19 + $0x178] sm:$0xff] %v1771_v47 }
 0x221   : > { %v1261_v48 = vpop.f32.mrb[24].mxu0 }
 0x222   : > { %2329 = vst [vmem:[%s3614_s19 + $0x180] sm:$0xff] %v1261_v48  ;;  %v1775_v49 = vpop.f32.mrb[24].mxu1  ;;  %v1263_v50 = vpop.f32.mrb[25].mxu0 }
 0x223   : > { %2331 = vst [vmem:[%s3614_s19 + $0x190] sm:$0xff] %v1775_v49  ;;  %2330 = vst [vmem:[%s3614_s19 + $0x188] sm:$0xff] %v1263_v50  ;;  %v1777_v51 = vpop.f32.mrb[25].mxu1 }
 0x224   : > { %2332 = vst [vmem:[%s3614_s19 + $0x198] sm:$0xff] %v1777_v51 }
 0x225   : > { %v1267_v52 = vpop.f32.mrb[26].mxu0 }
 0x226   : > { %2333 = vst [vmem:[%s3614_s19 + $0x1a0] sm:$0xff] %v1267_v52  ;;  %v1781_v53 = vpop.f32.mrb[26].mxu1  ;;  %v1269_v54 = vpop.f32.mrb[27].mxu0 }
 0x227   : > { %2335 = vst [vmem:[%s3614_s19 + $0x1b0] sm:$0xff] %v1781_v53  ;;  %2334 = vst [vmem:[%s3614_s19 + $0x1a8] sm:$0xff] %v1269_v54  ;;  %v1783_v55 = vpop.f32.mrb[27].mxu1 }
 0x228   : > { %2336 = vst [vmem:[%s3614_s19 + $0x1b8] sm:$0xff] %v1783_v55 }
 0x229   : > { %v1273_v56 = vpop.f32.mrb[28].mxu0 }
 0x22a   : > { %2337 = vst [vmem:[%s3614_s19 + $0x1c0] sm:$0xff] %v1273_v56  ;;  %v1787_v57 = vpop.f32.mrb[28].mxu1  ;;  %v1275_v58 = vpop.f32.mrb[29].mxu0 }
 0x22b   : > { %2339 = vst [vmem:[%s3614_s19 + $0x1d0] sm:$0xff] %v1787_v57  ;;  %2338 = vst [vmem:[%s3614_s19 + $0x1c8] sm:$0xff] %v1275_v58  ;;  %v1789_v59 = vpop.f32.mrb[29].mxu1 }
 0x22c   : > { %2340 = vst [vmem:[%s3614_s19 + $0x1d8] sm:$0xff] %v1789_v59 }
 0x22d   : > { %v1279_v60 = vpop.f32.mrb[30].mxu0 }
 0x22e   : > { %2341 = vst [vmem:[%s3614_s19 + $0x1e0] sm:$0xff] %v1279_v60  ;;  %v1793_v61 = vpop.f32.mrb[30].mxu1  ;;  %v1281_v62 = vpop.f32.mrb[31].mxu0 }
 0x22f   : > { %2343 = vst [vmem:[%s3614_s19 + $0x1f0] sm:$0xff] %v1793_v61  ;;  %2342 = vst [vmem:[%s3614_s19 + $0x1e8] sm:$0xff] %v1281_v62  ;;  %v1795_v63 = vpop.f32.mrb[31].mxu1 }
 0x230   : > { %2344 = vst [vmem:[%s3614_s19 + $0x1f8] sm:$0xff] %v1795_v63 }
 0x231   : > { %v1285_v0 = vpop.f32.mrb[32].mxu0 }
 0x232   : > { %2345 = vst [vmem:[%s3614_s19 + $0x200] sm:$0xff] %v1285_v0  ;;  %v1799_v1 = vpop.f32.mrb[32].mxu1  ;;  %v1287_v2 = vpop.f32.mrb[33].mxu0 }
 0x233   : > { %2347 = vst [vmem:[%s3614_s19 + $0x210] sm:$0xff] %v1799_v1  ;;  %2346 = vst [vmem:[%s3614_s19 + $0x208] sm:$0xff] %v1287_v2  ;;  %v1801_v3 = vpop.f32.mrb[33].mxu1 }
 0x234   : > { %2348 = vst [vmem:[%s3614_s19 + $0x218] sm:$0xff] %v1801_v3 }
 0x235   : > { %v1291_v4 = vpop.f32.mrb[34].mxu0 }
 0x236   : > { %2349 = vst [vmem:[%s3614_s19 + $0x220] sm:$0xff] %v1291_v4  ;;  %v1805_v5 = vpop.f32.mrb[34].mxu1  ;;  %v1293_v6 = vpop.f32.mrb[35].mxu0 }
 0x237   : > { %2351 = vst [vmem:[%s3614_s19 + $0x230] sm:$0xff] %v1805_v5  ;;  %2350 = vst [vmem:[%s3614_s19 + $0x228] sm:$0xff] %v1293_v6  ;;  %v1807_v7 = vpop.f32.mrb[35].mxu1 }
 0x238   : > { %2352 = vst [vmem:[%s3614_s19 + $0x238] sm:$0xff] %v1807_v7 }
 0x239   : > { %v1297_v8 = vpop.f32.mrb[36].mxu0 }
 0x23a   : > { %2353 = vst [vmem:[%s3614_s19 + $0x240] sm:$0xff] %v1297_v8  ;;  %v1811_v9 = vpop.f32.mrb[36].mxu1  ;;  %v1299_v10 = vpop.f32.mrb[37].mxu0 }
 0x23b   : > { %2355 = vst [vmem:[%s3614_s19 + $0x250] sm:$0xff] %v1811_v9  ;;  %2354 = vst [vmem:[%s3614_s19 + $0x248] sm:$0xff] %v1299_v10  ;;  %v1813_v11 = vpop.f32.mrb[37].mxu1 }
 0x23c   : > { %2356 = vst [vmem:[%s3614_s19 + $0x258] sm:$0xff] %v1813_v11 }
 0x23d   : > { %v1303_v12 = vpop.f32.mrb[38].mxu0 }
 0x23e   : > { %2357 = vst [vmem:[%s3614_s19 + $0x260] sm:$0xff] %v1303_v12  ;;  %v1817_v13 = vpop.f32.mrb[38].mxu1  ;;  %v1305_v14 = vpop.f32.mrb[39].mxu0 }
 0x23f   : > { %2359 = vst [vmem:[%s3614_s19 + $0x270] sm:$0xff] %v1817_v13  ;;  %2358 = vst [vmem:[%s3614_s19 + $0x268] sm:$0xff] %v1305_v14  ;;  %v1819_v15 = vpop.f32.mrb[39].mxu1 }
 0x240   : > { %2360 = vst [vmem:[%s3614_s19 + $0x278] sm:$0xff] %v1819_v15 }
 0x241   : > { %v1309_v16 = vpop.f32.mrb[40].mxu0 }
 0x242   : > { %2361 = vst [vmem:[%s3614_s19 + $0x280] sm:$0xff] %v1309_v16  ;;  %v1823_v17 = vpop.f32.mrb[40].mxu1  ;;  %v1311_v18 = vpop.f32.mrb[41].mxu0 }
 0x243   : > { %2363 = vst [vmem:[%s3614_s19 + $0x290] sm:$0xff] %v1823_v17  ;;  %2362 = vst [vmem:[%s3614_s19 + $0x288] sm:$0xff] %v1311_v18  ;;  %v1825_v19 = vpop.f32.mrb[41].mxu1 }
 0x244   : > { %2364 = vst [vmem:[%s3614_s19 + $0x298] sm:$0xff] %v1825_v19 }
 0x245   : > { %v1315_v20 = vpop.f32.mrb[42].mxu0 }
 0x246   : > { %2365 = vst [vmem:[%s3614_s19 + $0x2a0] sm:$0xff] %v1315_v20  ;;  %v1829_v21 = vpop.f32.mrb[42].mxu1  ;;  %v1317_v22 = vpop.f32.mrb[43].mxu0 }
 0x247   : > { %2367 = vst [vmem:[%s3614_s19 + $0x2b0] sm:$0xff] %v1829_v21  ;;  %2366 = vst [vmem:[%s3614_s19 + $0x2a8] sm:$0xff] %v1317_v22  ;;  %v1831_v23 = vpop.f32.mrb[43].mxu1 }
 0x248   : > { %2368 = vst [vmem:[%s3614_s19 + $0x2b8] sm:$0xff] %v1831_v23 }
 0x249   : > { %v1321_v24 = vpop.f32.mrb[44].mxu0 }
 0x24a   : > { %2369 = vst [vmem:[%s3614_s19 + $0x2c0] sm:$0xff] %v1321_v24  ;;  %v1835_v25 = vpop.f32.mrb[44].mxu1  ;;  %v1323_v26 = vpop.f32.mrb[45].mxu0 }
 0x24b   : > { %2371 = vst [vmem:[%s3614_s19 + $0x2d0] sm:$0xff] %v1835_v25  ;;  %2370 = vst [vmem:[%s3614_s19 + $0x2c8] sm:$0xff] %v1323_v26  ;;  %v1837_v27 = vpop.f32.mrb[45].mxu1 }
 0x24c   : > { %2372 = vst [vmem:[%s3614_s19 + $0x2d8] sm:$0xff] %v1837_v27 }
 0x24d   : > { %v1327_v28 = vpop.f32.mrb[46].mxu0 }
 0x24e   : > { %2373 = vst [vmem:[%s3614_s19 + $0x2e0] sm:$0xff] %v1327_v28  ;;  %v1841_v29 = vpop.f32.mrb[46].mxu1  ;;  %v1329_v30 = vpop.f32.mrb[47].mxu0 }
 0x24f   : > { %2375 = vst [vmem:[%s3614_s19 + $0x2f0] sm:$0xff] %v1841_v29  ;;  %2374 = vst [vmem:[%s3614_s19 + $0x2e8] sm:$0xff] %v1329_v30  ;;  %v1843_v31 = vpop.f32.mrb[47].mxu1 }
 0x250   : > { %2376 = vst [vmem:[%s3614_s19 + $0x2f8] sm:$0xff] %v1843_v31 }
 0x251   : > { %v1333_v32 = vpop.f32.mrb[48].mxu0 }
 0x252   : > { %2377 = vst [vmem:[%s3614_s19 + $0x300] sm:$0xff] %v1333_v32  ;;  %v1847_v33 = vpop.f32.mrb[48].mxu1  ;;  %v1335_v34 = vpop.f32.mrb[49].mxu0 }
 0x253   : > { %2379 = vst [vmem:[%s3614_s19 + $0x310] sm:$0xff] %v1847_v33  ;;  %2378 = vst [vmem:[%s3614_s19 + $0x308] sm:$0xff] %v1335_v34  ;;  %v1849_v35 = vpop.f32.mrb[49].mxu1 }
 0x254   : > { %2380 = vst [vmem:[%s3614_s19 + $0x318] sm:$0xff] %v1849_v35 }
 0x255   : > { %v1339_v36 = vpop.f32.mrb[50].mxu0 }
 0x256   : > { %2381 = vst [vmem:[%s3614_s19 + $0x320] sm:$0xff] %v1339_v36  ;;  %v1853_v37 = vpop.f32.mrb[50].mxu1  ;;  %v1341_v38 = vpop.f32.mrb[51].mxu0 }
 0x257   : > { %2383 = vst [vmem:[%s3614_s19 + $0x330] sm:$0xff] %v1853_v37  ;;  %2382 = vst [vmem:[%s3614_s19 + $0x328] sm:$0xff] %v1341_v38  ;;  %v1855_v39 = vpop.f32.mrb[51].mxu1 }
 0x258   : > { %2384 = vst [vmem:[%s3614_s19 + $0x338] sm:$0xff] %v1855_v39 }
 0x259   : > { %v1345_v40 = vpop.f32.mrb[52].mxu0 }
 0x25a   : > { %2385 = vst [vmem:[%s3614_s19 + $0x340] sm:$0xff] %v1345_v40  ;;  %v1859_v41 = vpop.f32.mrb[52].mxu1  ;;  %v1347_v42 = vpop.f32.mrb[53].mxu0 }
 0x25b   : > { %2387 = vst [vmem:[%s3614_s19 + $0x350] sm:$0xff] %v1859_v41  ;;  %2386 = vst [vmem:[%s3614_s19 + $0x348] sm:$0xff] %v1347_v42  ;;  %v1861_v43 = vpop.f32.mrb[53].mxu1 }
 0x25c   : > { %2388 = vst [vmem:[%s3614_s19 + $0x358] sm:$0xff] %v1861_v43 }
 0x25d   : > { %v1351_v44 = vpop.f32.mrb[54].mxu0 }
 0x25e   : > { %2389 = vst [vmem:[%s3614_s19 + $0x360] sm:$0xff] %v1351_v44  ;;  %v1865_v45 = vpop.f32.mrb[54].mxu1  ;;  %v1353_v46 = vpop.f32.mrb[55].mxu0 }
 0x25f   : > { %2391 = vst [vmem:[%s3614_s19 + $0x370] sm:$0xff] %v1865_v45  ;;  %2390 = vst [vmem:[%s3614_s19 + $0x368] sm:$0xff] %v1353_v46  ;;  %v1867_v47 = vpop.f32.mrb[55].mxu1 }
 0x260   : > { %2392 = vst [vmem:[%s3614_s19 + $0x378] sm:$0xff] %v1867_v47 }
 0x261   : > { %v1357_v48 = vpop.f32.mrb[56].mxu0 }
 0x262   : > { %2393 = vst [vmem:[%s3614_s19 + $0x380] sm:$0xff] %v1357_v48  ;;  %v1871_v49 = vpop.f32.mrb[56].mxu1  ;;  %v1359_v50 = vpop.f32.mrb[57].mxu0 }
 0x263   : > { %2395 = vst [vmem:[%s3614_s19 + $0x390] sm:$0xff] %v1871_v49  ;;  %2394 = vst [vmem:[%s3614_s19 + $0x388] sm:$0xff] %v1359_v50  ;;  %v1873_v51 = vpop.f32.mrb[57].mxu1 }
 0x264   : > { %2396 = vst [vmem:[%s3614_s19 + $0x398] sm:$0xff] %v1873_v51 }
 0x265   : > { %v1363_v52 = vpop.f32.mrb[58].mxu0 }
 0x266   : > { %2397 = vst [vmem:[%s3614_s19 + $0x3a0] sm:$0xff] %v1363_v52  ;;  %v1877_v53 = vpop.f32.mrb[58].mxu1  ;;  %v1365_v54 = vpop.f32.mrb[59].mxu0 }
 0x267   : > { %2399 = vst [vmem:[%s3614_s19 + $0x3b0] sm:$0xff] %v1877_v53  ;;  %2398 = vst [vmem:[%s3614_s19 + $0x3a8] sm:$0xff] %v1365_v54  ;;  %v1879_v55 = vpop.f32.mrb[59].mxu1 }
 0x268   : > { %2400 = vst [vmem:[%s3614_s19 + $0x3b8] sm:$0xff] %v1879_v55 }
 0x269   : > { %v1369_v56 = vpop.f32.mrb[60].mxu0 }
 0x26a   : > { %2401 = vst [vmem:[%s3614_s19 + $0x3c0] sm:$0xff] %v1369_v56  ;;  %v1883_v57 = vpop.f32.mrb[60].mxu1  ;;  %v1371_v58 = vpop.f32.mrb[61].mxu0 }
 0x26b   : > { %2403 = vst [vmem:[%s3614_s19 + $0x3d0] sm:$0xff] %v1883_v57  ;;  %2402 = vst [vmem:[%s3614_s19 + $0x3c8] sm:$0xff] %v1371_v58  ;;  %v1885_v59 = vpop.f32.mrb[61].mxu1 }
 0x26c   : > { %2404 = vst [vmem:[%s3614_s19 + $0x3d8] sm:$0xff] %v1885_v59 }
 0x26d   : > { %v1375_v60 = vpop.f32.mrb[62].mxu0 }
 0x26e   : > { %2405 = vst [vmem:[%s3614_s19 + $0x3e0] sm:$0xff] %v1375_v60  ;;  %v1889_v61 = vpop.f32.mrb[62].mxu1  ;;  %v1377_v62 = vpop.f32.mrb[63].mxu0 }
 0x26f   : > { %2407 = vst [vmem:[%s3614_s19 + $0x3f0] sm:$0xff] %v1889_v61  ;;  %2406 = vst [vmem:[%s3614_s19 + $0x3e8] sm:$0xff] %v1377_v62  ;;  %v1891_v63 = vpop.f32.mrb[63].mxu1 }
 0x270   : > { %2408 = vst [vmem:[%s3614_s19 + $0x3f8] sm:$0xff] %v1891_v63 }
 0x271   : > { %3086 = shalt.err (!%p3083_p8)
}
 0x272   : > { %s3087_s24 = scalar_lea.hbm %s3745_s6, 16384  ;;  %s3091_s26 = scalar_lea.hbm %s3802_s2, 32768 }
 0x273   : > { %p3088_p0 = scmp.ne.s32.totalorder %s3745_s6, %s3087_s24  ;;  %p3092_p12 = scmp.lt.u32.totalorder %s3745_s6, %s3802_s2 }
 0x274   : > { %p3093_p5 = scmp.lt.u32.totalorder %s3091_s26, %s3087_s24  ;;  %p3095_p9 = scmp.lt.u32.totalorder %s3087_s24, %s3745_s6 }
 0x275   : > { %p3089_p2 = pnand %p3088_p0, %p3821_p11 }
 0x276   : > { %p3094_p10 = por %p3093_p5, %p3092_p12 }
 0x277   : > { %p3090_p7 = pneg %p3089_p2 }
 0x278   : > { %p3096_p13 = por %p3095_p9, %p3094_p10 }
 0x27a   : > { %p3097_p4 = pnand %p3096_p13, %p3090_p7 }
 0x27c   : > { %3100 = shalt.err (!%p3097_p4)
}
 0x27d   : > { %s3167_s17 = smov 512   ;;  %s3168_s19 = smov 1024  }
 0x27e   : > { %s3169_s22 = smov 32  }
 0x27f   : > { %2942 = dma.vmem_to_hbm [thread:$0]  (%p3821_p11), %s3747_s8, 16384, %s3745_s6, %s2410_s12, %s3167_s17, %s3168_s19, %s3169_s22  }
 0x280 PF: > { %s2441_s15 = sand.u32 1, %s3139_s9   ;;  %p3822_p1 = scmp.ne.s32.totalorder %s3813_s21, 0 }
 0x281   : > { %p3823_p3 = scmp.ge.s32.totalorder %s3159_s14, 2  ;;  %s2442_s5 = scalar_lea.sflag [#allocation5], %s2441_s15 }
 0x283   : > { %p2953_p6 = pnand %p3823_p3, %p3822_p1 }
 0x285   : > { %3134 = dma.done.wait (!%p2953_p6), %s2442_s5, 16384  }
 0x286   : > { %3136 = vsyncadd (!%p2953_p6), %s2442_s5, 4294950912  ;;  %s19_s14 = sadd.s32 1, %s3159_s14   ;;  %s3824_s9 = smov %s3143_s10 }
 0x287   : > { %p16_p8 = scmp.ge.s32.totalorder %s19_s14, 4   ;;  %s3825_s10 = smov %s3147_s11 }
 0x288   : > { %s3826_s11 = smov %s3306_s7  ;;  %s3827_s12 = smov %s3155_s13 }
 0x289   : > { %s3828_s13 = smov %s3830_s27  ;;  %18 = sbr.rel (!%p16_p8) target bundleno = 7 (0x7), region = 87 }
 0x290   :  { %2447 = vsyncpa [#allocation4], 1 }
 0x291   :  { %2449 = vsyncpa [#allocation4 + $0x1], 1 }
 0x292   :  { %2450 = vsyncpa [#allocation7], 1 }
 0x293   :  { %2452 = vsyncpa [#allocation7 + $0x1], 1 }
 0x294   :  { %2453 = vsyncpa [#allocation5], 1 }
 0x295   :  { %2455 = vsyncpa [#allocation5 + $0x1], 1 }

</bundles_post_ra>
